<compile_context>
chip_gen: v7x
topology: tpu7x:2x2x1
jax: 0.10.0
libtpu: 0.0.40
codegen_flags: <defaults>
</compile_context>

<pallas_src>
import math
from functools import partial

import jax
import jax.numpy as jnp
from jax import lax
from jax.experimental import pallas as pl
from jax.experimental.pallas import tpu as pltpu


# ----------------------------------------------------------------------------
# Generation-aware VMEM budgeting
# ----------------------------------------------------------------------------
def _vmem_capacity_bytes():
    try:
        info = pltpu.get_tpu_info()
        cap = getattr(info, "vmem_capacity_bytes", None)
        if cap:
            return int(cap)
    except Exception:
        pass
    return 64 << 20  # conservative default (v7x per-TensorCore VMEM)


_VMEM_CAP = _vmem_capacity_bytes()
# Scoped-VMEM limit handed to Mosaic (leave headroom below physical).
_VMEM_LIMIT = int(max(32 << 20, min(_VMEM_CAP - (8 << 20), 120 << 20)))
# Per-grid-step live-set budget for the conv kernel.
_CONV_BUDGET = max(16 << 20, int(_VMEM_CAP * 0.55))
# Per-input-block budget for the purely streaming kernels (pool / relu).
_STREAM_BUDGET = max(4 << 20, min(16 << 20, _VMEM_CAP // 8))


def _conv_row_tile(H, W, Cin, tn, itemsize):
    """Largest divisor th of H whose conv per-step working set fits budget."""
    for th in range(H, 0, -1):
        if H % th:
            continue
        in_blk = (th + 2) * (W + 2) * Cin * itemsize      # x2 (double buffer)
        cat_tmp = (th + 2) * W * 3 * Cin * itemsize       # kw-concat / im2col
        lhs_tmp = th * W * 3 * Cin * itemsize             # reshaped lhs
        acc = th * W * tn * 4                             # f32 accumulator
        out_blk = th * W * tn * itemsize                  # x2 (double buffer)
        w_blk = 9 * Cin * tn * itemsize                   # x2 (double buffer)
        total = 2 * in_blk + cat_tmp + lhs_tmp + acc + 2 * out_blk + 2 * w_blk
        if total <= _CONV_BUDGET:
            return th
    return 1


def _row_tile(H, row_bytes):
    for th in range(H, 0, -1):
        if H % th:
            continue
        if th * row_bytes <= _STREAM_BUDGET:
            return th
    return 1


# ----------------------------------------------------------------------------
# Conv 3x3 (stride 1, pad 1) with fused bias (+ optional ReLU) epilogue
# ----------------------------------------------------------------------------
def _conv3x3_kernel(x_ref, w_ref, b_ref, o_ref, *, th, W, apply_relu):
    # x_ref: (1, 1, th+2, W+2, Cin)  activation row-block incl. 1-px halo
    # w_ref: (3, 3*Cin, tn)          weights, kh x (kw*Cin+ci) x co
    # b_ref: (1, tn)                 bias (float32)
    # o_ref: (1, th, W, tn)          output row-block
    cin = x_ref.shape[-1]
    tn = o_ref.shape[-1]
    xblk = x_ref[0, 0]  # (th+2, W+2, Cin)

    if cin >= 16:
        # kw-concat view (built once per block): (th+2, W, 3*Cin).
        # Then 3 accumulated MXU dots (one per kh) with 3*Cin contraction.
        xcat = jnp.concatenate(
            [xblk[:, kw:kw + W, :] for kw in range(3)], axis=-1)
        acc = jnp.zeros((th * W, tn), jnp.float32)
        for kh in range(3):
            lhs = xcat[kh:kh + th].reshape(th * W, 3 * cin)
            acc = acc + jnp.dot(lhs, w_ref[kh],
                                preferred_element_type=jnp.float32)
        acc = acc.reshape(th, W, tn)
    else:
        # Layer 0 (Cin=3): full 9-tap im2col (K = 9*Cin = 27) -> one MXU dot.
        taps = [xblk[kh:kh + th, kw:kw + W, :]
                for kh in range(3) for kw in range(3)]
        lhs = jnp.concatenate(taps, axis=-1).reshape(th * W, 9 * cin)
        wmat = w_ref[...].reshape(9 * cin, tn)
        acc = jnp.dot(lhs, wmat, preferred_element_type=jnp.float32)
        acc = acc.reshape(th, W, tn)

    acc = acc + b_ref[...].reshape(1, 1, tn)          # bias in f32
    if apply_relu:
        acc = jnp.maximum(acc, 0.0)                   # fused ReLU epilogue
    o_ref[0] = acc.astype(o_ref.dtype)


def conv3x3_pallas(x_nhwc, w_hwio, b, *, padding_mode, apply_relu):
    """3x3 conv, stride 1, padding 1 ('replicate' or 'zeros'), bias (+ReLU)."""
    N, H, W, Cin = x_nhwc.shape
    Cout = w_hwio.shape[-1]
    # Weights regrouped to (3, 3*Cin, Cout): row kw*Cin+ci matches the
    # kw-concatenated activation layout built inside the kernel.
    w3 = w_hwio.astype(x_nhwc.dtype).reshape(3, 3 * Cin, Cout)
    bmat = b.reshape(1, Cout).astype(jnp.float32)

    pad_mode = "edge" if padding_mode == "replicate" else "constant"
    xp = jnp.pad(x_nhwc, ((0, 0), (1, 1), (1, 1), (0, 0)), mode=pad_mode)

    itemsize = jnp.dtype(x_nhwc.dtype).itemsize
    tn = Cout if Cout <= 256 else 256
    assert Cout % tn == 0, "Cout must be a multiple of the channel tile"

    th = _conv_row_tile(H, W, Cin, tn, itemsize)
    nrb = H // th
    if nrb == 1:
        xrb = xp[:, None]               # free reshape: (N, 1, H+2, W+2, Cin)
    else:
        # Row blocks with a 2-row halo (~(th+2)/th of the input, NOT 9x im2col)
        xrb = jnp.stack([xp[:, r * th: r * th + th + 2] for r in range(nrb)],
                        axis=1)         # (N, nrb, th+2, W+2, Cin)

    # Give small-grid deep layers (e.g. 14x14 / 28x28, Cout=512, small N)
    # enough grid steps for megacore load-balancing and DMA/compute overlap.
    while tn > 128 and N * nrb * (Cout // tn) < 8 and Cout % (tn // 2) == 0:
        tn //= 2
    ncout = Cout // tn

    out = pl.pallas_call(
        partial(_conv3x3_kernel, th=th, W=W, apply_relu=apply_relu),
        out_shape=jax.ShapeDtypeStruct((N, H, W, Cout), x_nhwc.dtype),
        # Cout-tile axis OUTERMOST: the weight tile stays VMEM-resident for
        # the whole (N, row-block) sweep instead of being re-DMA'd each step.
        grid=(ncout, N, nrb),
        in_specs=[
            pl.BlockSpec((1, 1, th + 2, W + 2, Cin),
                         lambda c, n, r: (n, r, 0, 0, 0)),
            pl.BlockSpec((3, 3 * Cin, tn), lambda c, n, r: (0, 0, c)),
            pl.BlockSpec((1, tn), lambda c, n, r: (0, c)),
        ],
        out_specs=pl.BlockSpec((1, th, W, tn), lambda c, n, r: (n, r, 0, c)),
        compiler_params=pltpu.CompilerParams(
            dimension_semantics=("parallel", "parallel", "parallel"),
            vmem_limit_bytes=_VMEM_LIMIT),
    )(xrb, w3, bmat)
    return out


# ----------------------------------------------------------------------------
# Standalone ReLU (only used when a pre-ReLU conv output is tapped)
# ----------------------------------------------------------------------------
def _relu_kernel(x_ref, o_ref):
    o_ref[0] = jnp.maximum(x_ref[0], 0).astype(o_ref.dtype)


def relu_pallas(x_nhwc):
    N, H, W, C = x_nhwc.shape
    itemsize = jnp.dtype(x_nhwc.dtype).itemsize
    th = _row_tile(H, W * C * itemsize)
    return pl.pallas_call(
        _relu_kernel,
        out_shape=jax.ShapeDtypeStruct((N, H, W, C), x_nhwc.dtype),
        grid=(N, H // th),
        in_specs=[pl.BlockSpec((1, th, W, C), lambda n, r: (n, r, 0, 0))],
        out_specs=pl.BlockSpec((1, th, W, C), lambda n, r: (n, r, 0, 0)),
        compiler_params=pltpu.CompilerParams(
            dimension_semantics=("parallel", "parallel"),
            vmem_limit_bytes=_VMEM_LIMIT),
    )(x_nhwc)


# ----------------------------------------------------------------------------
# 2x2 pooling (stride 2): max / average / l2 (+ Scale, matching torch)
# ----------------------------------------------------------------------------
# TODO(synk): optionally fuse the 2x2 pool into the preceding conv epilogue to
# remove one full activation HBM round trip per pooling stage.
def _pool2x2_kernel(x_ref, o_ref, *, mode, scale):
    # x_ref: (1, tp, 2, Wh, 2*C) -- W-pairs folded into channels (free reshape)
    # o_ref: (1, tp, Wh, C)
    C = o_ref.shape[-1]
    x = x_ref[0]                                        # (tp, 2, Wh, 2C)
    if mode != "max":
        x = x.astype(jnp.float32)                       # f32 only where needed
    a = x[:, 0, :, :C]      # even row, even col
    b = x[:, 0, :, C:]      # even row, odd col
    c = x[:, 1, :, :C]      # odd row,  even col
    d = x[:, 1, :, C:]      # odd row,  odd col
    if mode == "max":
        r = jnp.maximum(jnp.maximum(a, b), jnp.maximum(c, d))  # native dtype
    elif mode == "average":
        r = (a + b + c + d) * (0.25 * scale)
    else:  # 'l2' == LPPool2d(2): (sum x^2)^(1/2), then Scale
        r = jnp.sqrt(a * a + b * b + c * c + d * d) * scale
    o_ref[0] = r.astype(o_ref.dtype)


def pool2x2_pallas(x_nhwc, *, mode, scale):
    N, H, W, C = x_nhwc.shape
    assert H % 2 == 0 and W % 2 == 0, "pooling expects even spatial dims"
    Hh, Wh = H // 2, W // 2
    # Free (metadata-only) reshape: exposes the 2x2 window without any HBM
    # transpose or extra copy.
    xr = x_nhwc.reshape(N, Hh, 2, Wh, 2 * C)
    itemsize = jnp.dtype(x_nhwc.dtype).itemsize
    tp = _row_tile(Hh, 2 * Wh * 2 * C * itemsize)
    return pl.pallas_call(
        partial(_pool2x2_kernel, mode=mode, scale=scale),
        out_shape=jax.ShapeDtypeStruct((N, Hh, Wh, C), x_nhwc.dtype),
        grid=(N, Hh // tp),
        in_specs=[pl.BlockSpec((1, tp, 2, Wh, 2 * C),
                               lambda n, r: (n, r, 0, 0, 0))],
        out_specs=pl.BlockSpec((1, tp, Wh, C), lambda n, r: (n, r, 0, 0)),
        compiler_params=pltpu.CompilerParams(
            dimension_semantics=("parallel", "parallel"),
            vmem_limit_bytes=_VMEM_LIMIT),
    )(xr)


# ----------------------------------------------------------------------------
# VGGFeatures (Pallas)
# ----------------------------------------------------------------------------
class VGGFeaturesPallas:
    pooling_scales = {"max": 1.0, "average": 2.0, "l2": 0.78}
    # torchvision vgg19 "features" configuration
    _vgg19_cfg = [64, 64, "M", 128, 128, "M", 256, 256, 256, 256, "M",
                  512, 512, 512, 512, "M", 512, 512, 512, 512, "M"]

    def __init__(self, layers, pooling="max", key=None,
                 compute_dtype=jnp.bfloat16):
        self.layers = sorted(set(layers))
        self.pooling = pooling
        self.pool_scale = self.pooling_scales[pooling]
        self.compute_dtype = compute_dtype

        # layer sequence exactly as vgg19(...).features[:max+1]
        seq, cin = [], 3
        for v in self._vgg19_cfg:
            if v == "M":
                seq.append(("pool", None, None))
            else:
                seq.append(("conv", cin, v))
                seq.append(("relu", None, None))
                cin = v
        self.seq = seq[: self.layers[-1] + 1]

        # deterministic synthetic weights (pretrained checkpoint not loaded)
        # TODO(synk): real pretrained VGG19 weights would be loaded here.
        key = jax.random.PRNGKey(0) if key is None else key
        self.params = []
        for kind, ci, co in self.seq:
            if kind == "conv":
                key, kw, kb = jax.random.split(key, 3)
                w = (jax.random.normal(kw, (3, 3, ci, co), jnp.float32)
                     / (3.0 * math.sqrt(ci))).astype(self.compute_dtype)
                b = 0.01 * jax.random.normal(kb, (co,), jnp.float32)
                self.params.append((w, b))
            else:
                self.params.append(None)

    @staticmethod
    def _get_min_size(layers):
        last_layer = max(layers)
        min_size = 1
        for layer in [4, 9, 18, 27, 36]:
            if last_layer < layer:
                break
            min_size *= 2
        return min_size

    @staticmethod
    def _to_nchw(x_nhwc):
        return jnp.transpose(x_nhwc, (0, 3, 1, 2))

    def __call__(self, input_nchw, layers=None):
        layers = self.layers if layers is None else sorted(set(layers))
        last = max(layers)
        h, w = input_nchw.shape[2:4]
        min_size = self._get_min_size(layers)
        if min(h, w) < min_size:
            raise ValueError(
                f"Input is {h}x{w} but must be at least {min_size}x{min_size}")

        feats = {"input": input_nchw}
        x = jnp.transpose(input_nchw, (0, 2, 3, 1)).astype(self.compute_dtype)
        i = 0
        while i <= last:
            kind = self.seq[i][0]
            if kind == "conv":
                w_, b_ = self.params[i]
                pad = "replicate" if i == 0 else "zeros"   # _change_padding_mode
                # Fuse the following ReLU unless the pre-ReLU output is tapped.
                fuse = (i + 1 <= last and self.seq[i + 1][0] == "relu"
                        and i not in layers)
                x = conv3x3_pallas(x, w_, b_, padding_mode=pad, apply_relu=fuse)
                if i in layers:
                    feats[i] = self._to_nchw(x)
                if fuse:
                    i += 1                                  # the fused ReLU layer
                    if i in layers:
                        feats[i] = self._to_nchw(x)
            elif kind == "relu":
                x = relu_pallas(x)
                if i in layers:
                    feats[i] = self._to_nchw(x)
            else:  # pool
                x = pool2x2_pallas(x, mode=self.pooling, scale=self.pool_scale)
                if i in layers:
                    feats[i] = self._to_nchw(x)
            i += 1
        return feats


# ----------------------------------------------------------------------------
# Pure-JAX reference (same bf16 pipeline) for correctness checking
# ----------------------------------------------------------------------------
def _ref_forward(model, input_nchw, layers):
    cd = model.compute_dtype
    x = jnp.transpose(input_nchw, (0, 2, 3, 1)).astype(cd)
    feats = {"input": input_nchw}
    for i in range(max(layers) + 1):
        kind = model.seq[i][0]
        if kind == "conv":
            w_, b_ = model.params[i]
            mode = "edge" if i == 0 else "constant"
            xp = jnp.pad(x, ((0, 0), (1, 1), (1, 1), (0, 0)), mode=mode)
            y = lax.conv_general_dilated(
                xp, w_, (1, 1), "VALID",
                dimension_numbers=("NHWC", "HWIO", "NHWC"),
                preferred_element_type=jnp.float32)
            x = (y + b_).astype(cd)
        elif kind == "relu":
            x = jnp.maximum(x, 0)
        else:
            xf = x.astype(jnp.float32)
            if model.pooling == "max":
                r = lax.reduce_window(xf, -jnp.inf, lax.max,
                                      (1, 2, 2, 1), (1, 2, 2, 1), "VALID")
            elif model.pooling == "average":
                r = lax.reduce_window(xf, 0.0, lax.add,
                                      (1, 2, 2, 1), (1, 2, 2, 1), "VALID") * 0.25
            else:
                r = jnp.sqrt(lax.reduce_window(xf * xf, 0.0, lax.add,
                                               (1, 2, 2, 1), (1, 2, 2, 1),
                                               "VALID"))
            x = (r * model.pool_scale).astype(cd)
        if i in layers:
            feats[i] = jnp.transpose(x, (0, 3, 1, 2))
    return feats


if __name__ == "__main__":
    # Small demo: layers [1, 3, 4] -> conv/relu/conv/relu/maxpool of VGG19
    layers = [1, 3, 4]
    model = VGGFeaturesPallas(layers, pooling="max")

    key = jax.random.PRNGKey(0)
    x = jax.random.normal(key, (2, 3, 16, 16), jnp.float32)   # NCHW, like torch

    feats = model(x)
    jax.block_until_ready(feats[max(layers)])

    # shape checks
    assert feats["input"].shape == (2, 3, 16, 16)
    assert feats[1].shape == (2, 64, 16, 16)
    assert feats[3].shape == (2, 64, 16, 16)
    assert feats[4].shape == (2, 64, 8, 8)

    # numerical check against a pure-JAX reference (same bf16 pipeline)
    ref = _ref_forward(model, x, layers)
    for k in layers:
        a = feats[k].astype(jnp.float32)
        b = ref[k].astype(jnp.float32)
        err = float(jnp.max(jnp.abs(a - b)))
        tol = 2e-2 * float(jnp.max(jnp.abs(b))) + 1e-2
        assert err <= tol, f"layer {k}: max abs err {err} > tol {tol}"

    # also exercise the non-fused conv tap and the standalone ReLU kernel
    layers2 = [0, 1, 4]
    feats2 = model(x, layers=layers2)
    jax.block_until_ready(feats2[4])
    ref2 = _ref_forward(model, x, layers2)
    for k in layers2:
        a = feats2[k].astype(jnp.float32)
        b = ref2[k].astype(jnp.float32)
        err = float(jnp.max(jnp.abs(a - b)))
        tol = 2e-2 * float(jnp.max(jnp.abs(b))) + 1e-2
        assert err <= tol, f"layer {k} (alt): max abs err {err} > tol {tol}"

    print("KERNEL_OK")
</pallas_src>

<mosaic_0001>
module attributes {stable_mosaic.version = 11 : i64} {
  func.func @_conv3x3_kernel(%arg0: i32, %arg1: i32, %arg2: i32, %arg3: memref<1x1x18x18x3xbf16, #tpu.memory_space<vmem>>, %arg4: memref<3x9x64xbf16, #tpu.memory_space<vmem>>, %arg5: memref<1x64xf32, #tpu.memory_space<vmem>>, %arg6: memref<1x16x16x64xbf16, #tpu.memory_space<vmem>>) attributes {dimension_semantics = [#tpu.dimension_semantics<parallel>, #tpu.dimension_semantics<parallel>, #tpu.dimension_semantics<parallel>], iteration_bounds = array<i64: 1, 2, 1>, scalar_prefetch = 0 : i64, scratch_operands = 0 : i64, tpu.core_type = #tpu.core_type<tc>, window_params = [{transform_indices = @transform_0, window_bounds = array<i64: 1, 1, 18, 18, 3>}, {transform_indices = @transform_1, window_bounds = array<i64: 3, 9, 64>}, {transform_indices = @transform_2, window_bounds = array<i64: 1, 64>}, {transform_indices = @transform_3, window_bounds = array<i64: 1, 16, 16, 64>}]} {
    %c0 = arith.constant 0 : index
    %c0_0 = arith.constant 0 : index
    %c0_1 = arith.constant 0 : index
    %c0_2 = arith.constant 0 : index
    %c0_3 = arith.constant 0 : index
    %0 = vector.load %arg3[%c0, %c0_0, %c0_1, %c0_2, %c0_3] : memref<1x1x18x18x3xbf16, #tpu.memory_space<vmem>>, vector<1x1x18x18x3xbf16>
    %1 = vector.shape_cast %0 : vector<1x1x18x18x3xbf16> to vector<18x18x3xbf16>
    %2 = vector.extract_strided_slice %1 {offsets = [0, 0, 0], sizes = [16, 16, 3], strides = [1, 1, 1]} : vector<18x18x3xbf16> to vector<16x16x3xbf16>
    %3 = vector.extract_strided_slice %1 {offsets = [0, 1, 0], sizes = [16, 16, 3], strides = [1, 1, 1]} : vector<18x18x3xbf16> to vector<16x16x3xbf16>
    %4 = vector.extract_strided_slice %1 {offsets = [0, 2, 0], sizes = [16, 16, 3], strides = [1, 1, 1]} : vector<18x18x3xbf16> to vector<16x16x3xbf16>
    %5 = vector.extract_strided_slice %1 {offsets = [1, 0, 0], sizes = [16, 16, 3], strides = [1, 1, 1]} : vector<18x18x3xbf16> to vector<16x16x3xbf16>
    %6 = vector.extract_strided_slice %1 {offsets = [1, 1, 0], sizes = [16, 16, 3], strides = [1, 1, 1]} : vector<18x18x3xbf16> to vector<16x16x3xbf16>
    %7 = vector.extract_strided_slice %1 {offsets = [1, 2, 0], sizes = [16, 16, 3], strides = [1, 1, 1]} : vector<18x18x3xbf16> to vector<16x16x3xbf16>
    %8 = vector.extract_strided_slice %1 {offsets = [2, 0, 0], sizes = [16, 16, 3], strides = [1, 1, 1]} : vector<18x18x3xbf16> to vector<16x16x3xbf16>
    %9 = vector.extract_strided_slice %1 {offsets = [2, 1, 0], sizes = [16, 16, 3], strides = [1, 1, 1]} : vector<18x18x3xbf16> to vector<16x16x3xbf16>
    %10 = vector.extract_strided_slice %1 {offsets = [2, 2, 0], sizes = [16, 16, 3], strides = [1, 1, 1]} : vector<18x18x3xbf16> to vector<16x16x3xbf16>
    %11 = tpu.concatenate %2, %3, %4, %5, %6, %7, %8, %9, %10 in 2 : vector<16x16x3xbf16>, vector<16x16x3xbf16>, vector<16x16x3xbf16>, vector<16x16x3xbf16>, vector<16x16x3xbf16>, vector<16x16x3xbf16>, vector<16x16x3xbf16>, vector<16x16x3xbf16>, vector<16x16x3xbf16> -> vector<16x16x27xbf16>
    %12 = vector.shape_cast %11 : vector<16x16x27xbf16> to vector<256x27xbf16>
    %c0_4 = arith.constant 0 : index
    %c0_5 = arith.constant 0 : index
    %c0_6 = arith.constant 0 : index
    %13 = vector.load %arg4[%c0_4, %c0_5, %c0_6] : memref<3x9x64xbf16, #tpu.memory_space<vmem>>, vector<3x9x64xbf16>
    %14 = vector.shape_cast %13 : vector<3x9x64xbf16> to vector<27x64xbf16>
    %cst = arith.constant dense<0.000000e+00> : vector<256x64xf32>
    %15 = tpu.matmul %12, %14, %cst {dimension_numbers = #tpu.dot_dimension_numbers<[1], [0], [0], [1], [0, 0, 1, 1], [], []>} : vector<256x27xbf16>, vector<27x64xbf16>, vector<256x64xf32> -> vector<256x64xf32>
    %16 = vector.shape_cast %15 : vector<256x64xf32> to vector<16x16x64xf32>
    %c0_7 = arith.constant 0 : index
    %c0_8 = arith.constant 0 : index
    %17 = vector.load %arg5[%c0_7, %c0_8] : memref<1x64xf32, #tpu.memory_space<vmem>>, vector<1x64xf32>
    %18 = vector.shape_cast %17 : vector<1x64xf32> to vector<1x1x64xf32>
    %19 = vector.broadcast %18 : vector<1x1x64xf32> to vector<16x16x64xf32>
    %20 = arith.addf %16, %19 : vector<16x16x64xf32>
    %cst_9 = arith.constant 0.000000e+00 : f32
    %21 = vector.broadcast %cst_9 : f32 to vector<16x16x64xf32>
    %22 = arith.maximumf %20, %21 : vector<16x16x64xf32>
    %23 = arith.truncf %22 : vector<16x16x64xf32> to vector<16x16x64xbf16>
    %c0_10 = arith.constant 0 : index
    %c0_11 = arith.constant 0 : index
    %c0_12 = arith.constant 0 : index
    %c0_13 = arith.constant 0 : index
    %24 = vector.load %arg6[%c0_10, %c0_11, %c0_12, %c0_13] : memref<1x16x16x64xbf16, #tpu.memory_space<vmem>>, vector<1x16x16x64xbf16>
    %25 = vector.shape_cast %24 : vector<1x16x16x64xbf16> to vector<16x16x64xbf16>
    %26 = vector.shape_cast %23 : vector<16x16x64xbf16> to vector<1x16x16x64xbf16>
    tpu.vector_store %arg6[%c0_10, %c0_11, %c0_12, %c0_13], %26 {strides = array<i32>} : memref<1x16x16x64xbf16, #tpu.memory_space<vmem>>, vector<1x16x16x64xbf16>,
    return
  }
  func.func @transform_0(%arg0: i32, %arg1: i32, %arg2: i32) -> (i32, i32, i32, i32, i32) {
    %c0_i32 = arith.constant 0 : i32
    %c0_i32_0 = arith.constant 0 : i32
    %c0_i32_1 = arith.constant 0 : i32
    %c0_i32_2 = arith.constant 0 : i32
    return %arg1, %arg2, %c0_i32, %c0_i32_0, %c0_i32_1 : i32, i32, i32, i32, i32
  }
  func.func @transform_1(%arg0: i32, %arg1: i32, %arg2: i32) -> (i32, i32, i32) {
    %c0_i32 = arith.constant 0 : i32
    %c0_i32_0 = arith.constant 0 : i32
    %c0_i32_1 = arith.constant 0 : i32
    return %c0_i32, %c0_i32_0, %arg0 : i32, i32, i32
  }
  func.func @transform_2(%arg0: i32, %arg1: i32, %arg2: i32) -> (i32, i32) {
    %c0_i32 = arith.constant 0 : i32
    %c0_i32_0 = arith.constant 0 : i32
    return %c0_i32, %arg0 : i32, i32
  }
  func.func @transform_3(%arg0: i32, %arg1: i32, %arg2: i32) -> (i32, i32, i32, i32) {
    %c0_i32 = arith.constant 0 : i32
    %c0_i32_0 = arith.constant 0 : i32
    return %arg1, %arg2, %c0_i32, %arg0 : i32, i32, i32, i32
  }
}

</mosaic_0001>

<bundles_post_ra>
// kernel: tpu_custom_call.1
= control target key start
LH: loop header
LB: loop body
LE: loop exit
PB: predicated region body
PF: predicated region fallthrough
CT: control target
= control target key end

     0   :  { %8 = vsyncpa [#allocation3], 0  ;;  %s3417_s0 = inlined_call_operand.vmem [shape: bf16[2,1,18,18,3], index: 0, kind: input, shape index: {}]   ;;  %s3418_s1 = inlined_call_operand.vmem [shape: bf16[3,9,64], index: 1, kind: input, shape index: {}]   ;;  %s3419_s2 = inlined_call_operand.vmem [shape: f32[1,64], index: 2, kind: input, shape index: {}]   ;;  %s3420_s3 = inlined_call_operand.hbm [shape: bf16[2,16,16,64], index: 3, kind: output, shape index: {}]  }
   0x1   :  { %10 = vsyncpa [#allocation3 + $0x1], 0  ;;  %s2471_s12 = smov 0   ;;  %s2473_s13 = smov 0  }
   0x2   :  { %s2475_s14 = smov 0   ;;  %s2477_s15 = smov 0  }
   0x3   :  { %s2479_s16 = smov 0   ;;  %s2481_s17 = smov 0  }
   0x4 LB: > { %s2050_s18 = sadd.s32 4294967295, %s2436_s17   ;;  %s2051_s19 = sadd.s32 4294967294, %s2436_s17   ;;  %s2436_s17 = sphi %s2481_s17, %s16_s17   ;;  %s2432_s16 = sphi %s2479_s16, %s3427_s16   ;;  %s2428_s15 = sphi %s2477_s15, %s3426_s15   ;;  %s2424_s14 = sphi %s2475_s14, %s3425_s14   ;;  %s2420_s13 = sphi %s2473_s13, %s3424_s13   ;;  %s2416_s12 = sphi %s2471_s12, %s3423_s12  }
   0x5   : > { %s31_s20 = sadd.s32 1, %s2432_s16  ;;  %s126_s21 = sadd.s32 1, %s2424_s14 }
   0x6   : > { %p33_p0 = scmp.ge.s32.totalorder %s31_s20, 2  ;;  %p136_p1 = scmp.ne.s32.totalorder %s2424_s14, %s2420_s13 }
   0x7   : > { %p137_p2 = scmp.eq.s32.totalorder %s2050_s18, 1  ;;  %p142_p3 = scmp.ne.s32.totalorder %s2420_s13, %s2416_s12 }
   0x8   : > { %s3429_s20 = smov (%p33_p0, %s31_s20), 0  ;;  %p143_p5 = scmp.eq.s32.totalorder %s2051_s19, 1 }
   0x9   : > { %p2511_p4 = por %p137_p2, %p136_p1  ;;  %s119_s23 = ssub.s32 %s2432_s16, %s3429_s20 }
   0xa   : > { %p2056_p6 = scmp.ge.s32.totalorder %s2436_s17, 1  ;;  %p124_p7 = scmp.eq.s32.totalorder %s119_s23, 0 }
   0xb   : > { %p2518_p8 = por %p143_p5, %p142_p3  ;;  %p186_p9 = scmp.lt.s32.totalorder %s2436_s17, 3 }
   0xc   : > { %s2524_s25 = scalar_select %p124_p7, %s2424_s14, %s126_s21  }
   0xd   : > { %p187_p10 = pnand %p2056_p6, %p186_p9 }
   0xe   : > { %p221_p11 = scmp.lt.s32.totalorder (!%p187_p10), %s2428_s15, 1  ;;  %vm646_vm0 = vcmask (!%p187_p10), 1046528   ;;  %s2438_s4 = smov (!%p187_p10), 9   ;;  %vm421_vm1 = vsmask.f32 (!%p187_p10), 7424  ;;  %vm1519_vm2 = vcmask (!%p187_p10), 1044480  }
   0xf   : > { %190 = sbr.rel (%p187_p10) target bundleno = 633 (0x279), region = 32  ;;  %s2439_s5 = smov (!%p187_p10), 6   ;;  %vm1520_vm3 = vcmask (!%p187_p10), 1045504   ;;  %vm965_vm4 = vcmask (!%p187_p10), 23552   ;;  %vm998_vm5 = vcmask (!%p187_p10), 48128   ;;  %vm1064_vm6 = vcmask (!%p187_p10), 97280  }
  0x10   : > { %s2440_s6 = smov (!%p187_p10), 3   ;;  %s2441_s7 = smov (!%p187_p10), 12   ;;  %vm1031_vm7 = vcmask (!%p187_p10), 72704   ;;  %vm1097_vm8 = vcmask (!%p187_p10), 121856   ;;  %vm1130_vm9 = vcmask (!%p187_p10), 146432   ;;  %vm1163_vm10 = vcmask (!%p187_p10), 171008  }
  0x11   : > { %s2442_s8 = smov (!%p187_p10), 15   ;;  %s2444_s11 = smov (!%p187_p10), 18   ;;  %vm1196_vm11 = vcmask (!%p187_p10), 195584   ;;  %vm1486_vm12 = vcmask (!%p187_p10), 220160   ;;  %vm1886_vm13 = vcmask (!%p187_p10), 519168  }
  0x12   : > { %s2445_s18 = smov (!%p187_p10), 21   ;;  %s2446_s19 = smov (!%p187_p10), 24  }
  0x13   : > { %s2448_s28 = smov (!%p187_p10), [#allocation2]  }
  0x14   : > { %s2362_s29 = sshll.u32 (!%p187_p10), %s2448_s28, 4  ;;  %s2363_s29 = int_to_ptr.vmem [resolvable:$false] %s2362_s29 }
  0x15   : > { %s2364_s9 = scalar_lea.vmem (!%p187_p10), %s2363_s29, 4096 }
  0x16   : > { %s222_s26 = scalar_select %p221_p11, %s2428_s15, 1 }
  0x18   : > { %s2252_s27 = smul.u32 216, %s222_s26 }
  0x1a   : > { %s2531_s30 = scalar_lea.vmem %s3417_s0, %s2252_s27 }
  0x1b   : > { %v2534_v0 = vld [vmem:[%s2531_s30 + $0x6c] sm:$0xff]   ;;  %v2544_v2 = vld [vmem:[%s2531_s30 + $0x60] sm:$0xff]   ;;  %v2323_v3 = vld [vmem:[%s2531_s30 + $0x68] ss:$0 sps:$4 sm:$0x11]  }
  0x1c   : > { %v2537_v1 = vld [vmem:[%s2531_s30 + $0xc] sm:$0xff]   ;;  %748 = vrot.lane.b32.xlu1 %v2534_v0, %s2438_s4  ;;  %v2548_v4 = vld [vmem:[%s2531_s30] sm:$0xff]   ;;  %v674_v5 = vrot.slane %v2534_v0, 1  ;;  %v671_v6 = vrot.slane %v2544_v2, 1  ;;  %v672_v7 = vrot.slane %v2323_v3, 1  ;;  %v531_v26 = vshrl.u32 %v2534_v0, 16 }
  0x1d   : > { %732 = vrot.lane.b32.xlu0 %v2537_v1, %s2438_s4  ;;  %v2325_v8 = vld [vmem:[%s2531_s30 + $0x8] ss:$0 sps:$4 sm:$0x11]   ;;  %v650_v9 = vrot.slane %v2537_v1, 1  ;;  %v647_v10 = vrot.slane %v2548_v4, 1  ;;  %v435_v16 = vshrl.u32 %v2537_v1, 16 }
  0x1e   : > { %v2326_v11 = vld [vmem:[%s2531_s30 + $0x74] ss:$0 sps:$4 sm:$0x11]   ;;  %v2557_v12 = vsel %vm646_vm0, %v671_v6, %v672_v7  ;;  %v648_v13 = vrot.slane %v2325_v8, 1  ;;  %v437_v17 = vshll.u32 %v2537_v1, 16  ;;  %v423_v18 = vshrl.u32 %v2548_v4, 16 }
  0x1f   : > { %v2327_v14 = vld [vmem:[%s2531_s30 + $0x14] ss:$0 sps:$4 sm:$0x11]   ;;  %v675_v15 = vrot.slane %v2326_v11, 1  ;;  %v425_v22 = vshll.u32 %v2548_v4, 16  ;;  %v430_v25 = vshll.u32 %v2325_v8, 16 }
  0x20   : > { %711 = vrot.lane.b32.xlu1 %v2557_v12, %s2439_s5  ;;  %v649_v19 = vsel %vm646_vm0, %v647_v10, %v648_v13  ;;  %v651_v20 = vrot.slane %v2327_v14, 1  ;;  %v442_v21 = vshll.u32 %v2327_v14, 16  ;;  %v439_v24 = vrot.slane %v437_v17, 1  ;;  %v2581_v39 = vld [vmem:[%s2531_s30 + $0x78] sm:$0xff]   ;;  %v2624_v6 = vld [vmem:[%s2531_s30 + $0x84] sm:$0xff]  }
  0x21   : > { %695 = vrot.lane.b32.xlu0 %v649_v19, %s2439_s5  ;;  %v2569_v23 = vsel %vm646_vm0, %v674_v5, %v675_v15  ;;  %v427_v29 = vrot.slane %v425_v22, 1  ;;  %v533_v30 = vshll.u32 %v2534_v0, 16  ;;  %v432_v32 = vrot.slane %v430_v25, 1  ;;  %v2588_v46 = vld [vmem:[%s2531_s30 + $0x18] sm:$0xff]   ;;  %v2631_v10 = vld [vmem:[%s2531_s30 + $0x24] sm:$0xff]  }
  0x22   : > { %v2573_v27 = vsel %vm646_vm0, %v650_v9, %v651_v20  ;;  %v444_v28 = vrot.slane %v442_v21, 1  ;;  %v440_v31 = vor.u32 %v439_v24, %v435_v16  ;;  %v538_v33 = vshll.u32 %v2326_v11, 16  ;;  %v2330_v47 = vld [vmem:[%s2531_s30 + $0x80] ss:$0 sps:$4 sm:$0x11]  }
  0x23   : > { %v519_v34 = vshrl.u32 %v2544_v2, 16  ;;  %v428_v35 = vor.u32 %v427_v29, %v423_v18  ;;  %v535_v36 = vrot.slane %v533_v30, 1  ;;  %v521_v37 = vshll.u32 %v2544_v2, 16  ;;  %v2331_v52 = vld [vmem:[%s2531_s30 + $0x20] ss:$0 sps:$4 sm:$0x11]  }
  0x24   : > { %713 = vrot.lane.b32.xlu1 %v2569_v23, %s2439_s5  ;;  %v526_v38 = vshll.u32 %v2323_v3, 16  ;;  %v445_v40 = vsel %vm421_vm1, %v440_v31, %v444_v28  ;;  %v540_v41 = vrot.slane %v538_v33, 1  ;;  %v545_v50 = vshll.u32 %v2581_v39, 16  ;;  %v2634_v13 = vld [vmem:[%s2531_s30 + $0x8c] ss:$0 sps:$4 sm:$0x11]  }
  0x25   : > { %697 = vrot.lane.b32.xlu0 %v2573_v27, %s2439_s5  ;;  %v433_v42 = vsel %vm421_vm1, %v428_v35, %v432_v32  ;;  %v536_v43 = vor.u32 %v535_v36, %v531_v26  ;;  %v523_v44 = vrot.slane %v521_v37, 1  ;;  %v449_v53 = vshll.u32 %v2588_v46, 16  ;;  %v2640_v15 = vld [vmem:[%s2531_s30 + $0x2c] ss:$0 sps:$4 sm:$0x11]  }
  0x26   : > { %v528_v45 = vrot.slane %v526_v38, 1  ;;  %v543_v54 = vshrl.u32 %v2581_v39, 16  ;;  %v547_v55 = vrot.slane %v545_v50, 1  ;;  %v550_v56 = vshll.u32 %v2330_v47, 16 }
  0x27   : > { %v2593_v48 = vsel %vm421_vm1, %v536_v43, %v540_v41  ;;  %v524_v49 = vor.u32 %v523_v44, %v519_v34  ;;  %v447_v57 = vshrl.u32 %v2588_v46, 16  ;;  %v451_v58 = vrot.slane %v449_v53, 1  ;;  %v2095_v28 = vld.sshfl [vmem:[%s3418_s1] sm:$0x33 pattern:$0x75316420] }
  0x28   : > { %616 = vrot.lane.b32.xlu1 %v445_v40, %s2440_s6  ;;  %v454_v59 = vshll.u32 %v2331_v52, 16  ;;  %v548_v60 = vor.u32 %v547_v55, %v543_v54  ;;  %v552_v61 = vrot.slane %v550_v56, 1  ;;  %v677_v7 = vrot.slane %v2581_v39, 1 }
  0x29   : > { %614 = vrot.lane.b32.xlu0 %v433_v42, %s2440_s6  ;;  %v2598_v51 = vsel %vm421_vm1, %v524_v49, %v528_v45  ;;  %v452_v62 = vor.u32 %v451_v58, %v447_v57  ;;  %v678_v8 = vrot.slane %v2330_v47, 1  ;;  %v653_v9 = vrot.slane %v2588_v46, 1  ;;  %v2096_v33 = vld.sshfl [vmem:[%s3418_s1 + $0x4] sm:$0x1 pattern:$0x75316420] }
  0x2a   : > { %v456_v63 = vrot.slane %v454_v59, 1  ;;  %v2615_v3 = vsel %vm421_vm1, %v548_v60, %v552_v61  ;;  %v654_v11 = vrot.slane %v2331_v52, 1  ;;  %v557_v14 = vshll.u32 %v2624_v6, 16 }
  0x2b   : > { %v2643_v16 = vsel %vm646_vm0, %v677_v7, %v678_v8  ;;  %v461_v17 = vshll.u32 %v2631_v10, 16  ;;  %v562_v19 = vshll.u32 %v2634_v13, 16  ;;  %v555_v20 = vshrl.u32 %v2624_v6, 16 }
  0x2c   : > { %632 = vrot.lane.b32.xlu1 %v2593_v48, %s2440_s6  ;;  %v2619_v5 = vsel %vm421_vm1, %v452_v62, %v456_v63  ;;  %v2649_v18 = vsel %vm646_vm0, %v653_v9, %v654_v11  ;;  %v559_v21 = vrot.slane %v557_v14, 1  ;;  %v466_v22 = vshll.u32 %v2640_v15, 16  ;;  %v2097_v35 = vld.sshfl [vmem:[%s3418_s1 + $0x8] sm:$0x33 pattern:$0x75316420] }
  0x2d   : > { %630 = vrot.lane.b32.xlu0 %v2598_v51, %s2440_s6  ;;  %v1252_v24 = vlaneseq  ;;  %v459_v25 = vshrl.u32 %v2631_v10, 16  ;;  %v463_v26 = vrot.slane %v461_v17, 1  ;;  %v2443_v29 = vmov 1966171168  }
  0x2e   : > { %v1250_v30 = vunpack.c.l.s4 %v2443_v29  ;;  %v560_v31 = vor.u32 %v559_v21, %v555_v20  ;;  %v468_v32 = vrot.slane %v466_v22, 1  ;;  %v1248_v36 = vcombine.high %v2095_v28, %v2095_v28  ;;  %v2098_v41 = vld.sshfl [vmem:[%s3418_s1 + $0xc] sm:$0x1 pattern:$0x75316420] }
  0x2f   : > { %v1253_v34 = vshrl.u32 %v1252_v24, 7  ;;  %v464_v38 = vor.u32 %v463_v26, %v459_v25  ;;  %v2099_v43 = vld.sshfl [vmem:[%s3418_s1 + $0x10] sm:$0x33 pattern:$0x75316420] }
  0x30   : > { %750 = vrot.lane.b32.xlu1 %v2581_v39, %s2438_s4  ;;  %v1251_v37 = vunpack.c.0.s8 %v1250_v30  ;;  %v1324_v45 = vcombine.high %v2099_v43, %v2099_v43  ;;  %v2100_v61 = vld.sshfl [vmem:[%s3418_s1 + $0x14] sm:$0x1 pattern:$0x75316420] }
  0x31   : > { %734 = vrot.lane.b32.xlu0 %v2588_v46, %s2438_s4  ;;  %v2692_v53 = vsel %vm421_vm1, %v464_v38, %v468_v32 }
  0x32   : > { %v2675_v42 = vsub.s32 %v1251_v37, %v1253_v34  ;;  %v680_v37 = vrot.slane %v2624_v6, 1 }
  0x34   : > { %795 = vrot.lane.b32.xlu1 %v2593_v48, %s2441_s7  ;;  %v1255_v47 = vrot.slane %v2095_v28, %v2675_v42  ;;  %v1262_v49 = vrot.slane %v1248_v36, %v2675_v42  ;;  %v1278_v50 = vrot.slane %v2096_v33, %v2675_v42  ;;  %v1293_v52 = vrot.slane %v2097_v35, %v2675_v42 }
  0x35   : > { %779 = vrot.lane.b32.xlu0 %v445_v40, %s2441_s7  ;;  %v1286_v40 = vcombine.high %v2097_v35, %v2097_v35  ;;  %v1316_v55 = vrot.slane %v2098_v41, %v2675_v42  ;;  %v1331_v56 = vrot.slane %v2099_v43, %v2675_v42  ;;  %v1338_v8 = vrot.slane %v1324_v45, %v2675_v42 }
  0x36   : > { %v1301_v57 = vcombine.high %v1293_v52, %v1293_v52  ;;  %v1365_v58 = vunpack.i.h.s16 %v1293_v52  ;;  %v2101_v59 = vpack.i.b16 %v1293_v52, %v1278_v50  ;;  %v1396_v60 = vcombine.low %v1255_v47, %v1262_v49 }
  0x37   : > { %v1300_v54 = vrot.slane %v1286_v40, %v2675_v42  ;;  %v2106_v7 = vcombine.high %v1255_v47, %v1262_v49  ;;  %v1339_v17 = vcombine.high %v1331_v56, %v1331_v56  ;;  %v1340_v21 = vcombine.high %v1338_v8, %v1338_v8 }
  0x38   : > { %797 = vrot.lane.b32.xlu1 %v2615_v3, %s2441_s7  ;;  %v1369_v9 = vunpack.i.h.s16 %v1301_v57  ;;  %v1406_v14 = vrot.slane %v1396_v60, %v2675_v42  ;;  %v1354_v22 = vrot.slane %v2100_v61, %v2675_v42  ;;  %v681_v40 = vrot.slane %v2634_v13, 1  ;;  %v2338_v61 = vld [vmem:[%s2531_s30 + $0x98] ss:$0 sps:$4 sm:$0x11]  }
  0x39   : > { %781 = vrot.lane.b32.xlu0 %v2619_v5, %s2441_s7  ;;  %v1302_v62 = vcombine.high %v1300_v54, %v1300_v54  ;;  %v1367_v63 = vunpack.i.h.s16 %v1300_v54  ;;  %v2102_v11 = vpack.i.b16 %v1300_v54, %v1365_v58  ;;  %v1413_v20 = vrot.slane %v2106_v7, %v2675_v42 }
  0x3a   : > { %v1381_v28 = vunpack.i.l.s16 %v1354_v22  ;;  %v656_v47 = vrot.slane %v2631_v10, 1  ;;  %v657_v49 = vrot.slane %v2640_v15, 1 }
  0x3b   : > { %v2104_v24 = vpack.i.b16 %v1302_v62, %v1369_v9  ;;  %v1398_v25 = vcombine.low %v2101_v59, %v2102_v11  ;;  %v1371_v26 = vunpack.i.h.s16 %v1302_v62  ;;  %v574_v9 = vshll.u32 %v2338_v61, 16 }
  0x3c   : > { %830 = vrot.lane.b32.xlu1 %v2569_v23, %s2442_s8  ;;  %v1447_v33 = vcombine.low %v1340_v21, %v1381_v28  ;;  %v658_v59 = vsel %vm646_vm0, %v656_v47, %v657_v49 }
  0x3d   : > { %814 = vrot.lane.b32.xlu0 %v2573_v27, %s2442_s8  ;;  %v564_v27 = vrot.slane %v562_v19, 1  ;;  %v2103_v19 = vpack.i.b16 %v1301_v57, %v1367_v63  ;;  %v1420_v30 = vrot.slane %v1398_v25, %v2675_v42  ;;  %v2105_v32 = vpack.i.b16 %v1316_v55, %v1371_v26  ;;  %v2339_v63 = vld [vmem:[%s2531_s30 + $0x38] ss:$0 sps:$4 sm:$0x11]  }
  0x3e   : > { %v1468_v38 = vrot.slane %v1447_v33, %v2675_v42  ;;  %v2447_v55 = vmov 65535   ;;  %v684_v26 = vrot.slane %v2338_v61, 1  ;;  %v660_v28 = vrot.slane %v2339_v63, 1  ;;  %v2343_v33 = vld [vmem:[%s2531_s30 + $0x44] ss:$0 sps:$4 sm:$0x11]  }
  0x3f   : > { %v2683_v44 = vsel %vm421_vm1, %v560_v31, %v564_v27  ;;  %v1446_v27 = vcombine.low %v1338_v8, %v1339_v17  ;;  %v1399_v29 = vcombine.low %v2103_v19, %v2104_v24  ;;  %v1428_v31 = vcombine.low %v1406_v14, %v1413_v20 }
  0x40   : > { %832 = vrot.lane.b32.xlu1 %v2643_v16, %s2442_s8  ;;  %v1445_v35 = vcombine.low %v2105_v32, %v1331_v56  ;;  %v1483_v54 = vrot.slane %v1468_v38, %v2675_v42  ;;  %v1521_v13 = vsel %vm1519_vm2, 4294967295, %v2447_v55  ;;  %v682_v56 = vsel %vm646_vm0, %v680_v37, %v681_v40 }
  0x41   : > { %816 = vrot.lane.b32.xlu0 %v2649_v18, %s2442_s8  ;;  %v1427_v34 = vrot.slane %v1399_v29, %v2675_v42  ;;  %v1461_v36 = vrot.slane %v1446_v27, %v2675_v42  ;;  %v1436_v43 = vrot.slane %v1428_v31, %v2675_v42  ;;  %v1522_v15 = vsel %vm1520_vm3, %v1521_v13, 0  ;;  %v2780_v29 = vld [vmem:[%s2531_s30 + $0x9c] sm:$0xff]   ;;  %v2342_v31 = vld [vmem:[%s2531_s30 + $0xa4] ss:$0 sps:$4 sm:$0x11]  }
  0x42   : > { %v1454_v45 = vrot.slane %v1445_v35, %v2675_v42  ;;  %v478_v14 = vshll.u32 %v2339_v63, 16  ;;  %v576_v19 = vrot.slane %v574_v9, 1  ;;  %v581_v32 = vshll.u32 %v2780_v29, 16 }
  0x43   : > { %v1429_v41 = vcombine.low %v1420_v30, %v1427_v34  ;;  %v2785_v30 = vld [vmem:[%s2531_s30 + $0x3c] sm:$0xff]   ;;  %v579_v35 = vshrl.u32 %v2780_v29, 16  ;;  %v586_v37 = vshll.u32 %v2342_v31, 16 }
  0x44   : > { %867 = vrot.lane.b32.xlu1 %v2581_v39, %s2444_s11  ;;  %v1469_v52 = vcombine.low %v1454_v45, %v1461_v36  ;;  %v480_v21 = vrot.slane %v478_v14, 1  ;;  %v485_v34 = vshll.u32 %v2785_v30, 16  ;;  %v583_v36 = vrot.slane %v581_v32, 1 }
  0x45   : > { %851 = vrot.lane.b32.xlu0 %v2588_v46, %s2444_s11  ;;  %v1443_v50 = vrot.slane %v1429_v41, %v2675_v42  ;;  %v483_v38 = vshrl.u32 %v2785_v30, 16  ;;  %v490_v41 = vshll.u32 %v2343_v33, 16  ;;  %v588_v45 = vrot.slane %v586_v37, 1 }
  0x46   : > { %v1476_v58 = vrot.slane %v1469_v52, %v2675_v42  ;;  %v2749_v42 = vld [vmem:[%s2531_s30 + $0x30] sm:$0xff]   ;;  %v487_v40 = vrot.slane %v485_v34, 1 }
  0x47   : > { %v1444_v57 = vcombine.low %v1436_v43, %v1443_v50  ;;  %v473_v7 = vshll.u32 %v2749_v42, 16  ;;  %v659_v27 = vrot.slane %v2749_v42, 1  ;;  %v584_v43 = vor.u32 %v583_v36, %v579_v35 }
  0x48   : > { %869 = vrot.lane.b32.xlu1 %v2624_v6, %s2444_s11  ;;  %v1484_v60 = vcombine.low %v1476_v58, %v1483_v54  ;;  %v488_v47 = vor.u32 %v487_v40, %v483_v38  ;;  %v492_v49 = vrot.slane %v490_v41, 1  ;;  %v687_v58 = vrot.slane %v2342_v31, 1 }
  0x49   : > { %853 = vrot.lane.b32.xlu0 %v2631_v10, %s2444_s11  ;;  %2212 = vmatprep.subr.bf16.mxu0 %v1444_v57  ;;  %v475_v11 = vrot.slane %v473_v7, 1  ;;  %v589_v52 = vsel %vm421_vm1, %v584_v43, %v588_v45 }
  0x4a   : > { %2248 = vmatprep.subr.bf16.mxu1 %v1444_v57  ;;  %2213 = vmatpush3.bf16.msra.mxu0 %v1444_v57  ;;  %v493_v55 = vsel %vm421_vm1, %v488_v47, %v492_v49 }
  0x4b   : > { %2250 = vmatpush3.bf16.msra.mxu1 %v1444_v57  ;;  %v686_v57 = vrot.slane %v2780_v29, 1 }
  0x4c   : > { %914 = vrot.lane.b32.xlu1 %v2615_v3, %s2445_s18 }
  0x4d   : > { %898 = vrot.lane.b32.xlu0 %v2619_v5, %s2445_s18  ;;  %v688_v61 = vsel %vm646_vm0, %v686_v57, %v687_v58 }
  0x50   : > { %916 = vrot.lane.b32.xlu1 %v2683_v44, %s2445_s18 }
  0x51   : > { %900 = vrot.lane.b32.xlu0 %v2692_v53, %s2445_s18 }
  0x54   : > { %949 = vrot.lane.b32.xlu1 %v2643_v16, %s2446_s19 }
  0x55   : > { %933 = vrot.lane.b32.xlu0 %v2649_v18, %s2446_s19 }
  0x58   : > { %634 = vrot.lane.b32.xlu1 %v2615_v3, %s2440_s6  ;;  %v1524_v3 = vand.u32 %v1522_v15, %v1484_v60  ;;  %v663_v60 = vrot.slane %v2343_v33, 1 }
  0x59   : > { %618 = vrot.lane.b32.xlu0 %v2619_v5, %s2440_s6  ;;  %v2744_v5 = vld [vmem:[%s2531_s30 + $0x90] sm:$0xff]  }
  0x5a   : > { %2214 = vmatprep.subr.bf16.mxu0 %v1524_v3  ;;  %2249 = vmatprep.subr.bf16.mxu1 %v1524_v3  ;;  %v569_v62 = vshll.u32 %v2744_v5, 16  ;;  %v683_v25 = vrot.slane %v2744_v5, 1 }
  0x5b   : > { %2215 = vmatpush3.bf16.msra.mxu0 %v1524_v3  ;;  %2251 = vmatpush3.bf16.msra.mxu1 %v1524_v3 }
  0x5c   : > { %951 = vrot.lane.b32.xlu1 %v682_v56, %s2446_s19  ;;  %v571_v8 = vrot.slane %v569_v62, 1 }
  0x5d   : > { %935 = vrot.lane.b32.xlu0 %v658_v59, %s2446_s19 }
  0x60   : > { %636 = vrot.lane.b32.xlu1 %v2683_v44, %s2440_s6 }
  0x61   : > { %620 = vrot.lane.b32.xlu0 %v2692_v53, %s2440_s6 }
  0x64   : > { %715 = vrot.lane.b32.xlu1 %v2643_v16, %s2439_s5  ;;  %v567_v16 = vshrl.u32 %v2744_v5, 16 }
  0x65   : > { %699 = vrot.lane.b32.xlu0 %v2649_v18, %s2439_s5  ;;  %v471_v18 = vshrl.u32 %v2749_v42, 16 }
  0x66   : > { %v572_v17 = vor.u32 %v571_v8, %v567_v16 }
  0x67   : > { %v476_v20 = vor.u32 %v475_v11, %v471_v18  ;;  %v2846_v11 = vld [vmem:[%s2531_s30 + $0xa8] sm:$0xff]  }
  0x68   : > { %717 = vrot.lane.b32.xlu1 %v682_v56, %s2439_s5  ;;  %v577_v22 = vsel %vm421_vm1, %v572_v17, %v576_v19  ;;  %v2852_v17 = vld [vmem:[%s2531_s30 + $0x48] sm:$0xff]   ;;  %v689_v57 = vrot.slane %v2846_v11, 1 }
  0x69   : > { %701 = vrot.lane.b32.xlu0 %v658_v59, %s2439_s5  ;;  %v481_v24 = vsel %vm421_vm1, %v476_v20, %v480_v21  ;;  %v2346_v20 = vld [vmem:[%s2531_s30 + $0xb0] ss:$0 sps:$4 sm:$0x11]   ;;  %v593_v21 = vshll.u32 %v2846_v11, 16  ;;  %v495_v31 = vshrl.u32 %v2852_v17, 16 }
  0x6a   : > { %v690_v58 = vrot.slane %v2346_v20, 1 }
  0x6c   : > { %752 = vrot.lane.b32.xlu1 %v2624_v6, %s2438_s4 }
  0x6d   : > { %736 = vrot.lane.b32.xlu0 %v2631_v10, %s2438_s4 }
  0x70   : > { %754 = vrot.lane.b32.xlu1 %v2744_v5, %s2438_s4 }
  0x71   : > { %738 = vrot.lane.b32.xlu0 %v2749_v42, %s2438_s4 }
  0x74   : > { %799 = vrot.lane.b32.xlu1 %v2683_v44, %s2441_s7  ;;  %v685_v44 = vsel %vm646_vm0, %v683_v25, %v684_v26  ;;  %v497_v25 = vshll.u32 %v2852_v17, 16 }
  0x75   : > { %783 = vrot.lane.b32.xlu0 %v2692_v53, %s2441_s7  ;;  %v661_v53 = vsel %vm646_vm0, %v659_v27, %v660_v28  ;;  %v591_v27 = vshrl.u32 %v2846_v11, 16  ;;  %v595_v28 = vrot.slane %v593_v21, 1 }
  0x76   : > { %v499_v32 = vrot.slane %v497_v25, 1  ;;  %v2908_v25 = vld [vmem:[%s2531_s30 + $0xb4] sm:$0xff]  }
  0x77   : > { %v596_v35 = vor.u32 %v595_v28, %v591_v27 }
  0x78   : > { %801 = vrot.lane.b32.xlu1 %v577_v22, %s2441_s7  ;;  %v500_v38 = vor.u32 %v499_v32, %v495_v31 }
  0x79   : > { %785 = vrot.lane.b32.xlu0 %v481_v24, %s2441_s7 }
  0x7c   : > { %834 = vrot.lane.b32.xlu1 %v682_v56, %s2442_s8 }
  0x7d   : > { %818 = vrot.lane.b32.xlu0 %v658_v59, %s2442_s8  ;;  %v662_v59 = vrot.slane %v2785_v30, 1 }
  0x7f   : > { %v2831_v63 = vsel %vm646_vm0, %v662_v59, %v663_v60 }
  0x80   : > { %836 = vrot.lane.b32.xlu1 %v685_v44, %s2442_s8 }
  0x81   : > { %820 = vrot.lane.b32.xlu0 %v661_v53, %s2442_s8 }
  0x84   : > { %871 = vrot.lane.b32.xlu1 %v2744_v5, %s2444_s11 }
  0x85   : > { %855 = vrot.lane.b32.xlu0 %v2749_v42, %s2444_s11 }
  0x88   : > { %873 = vrot.lane.b32.xlu1 %v2780_v29, %s2444_s11 }
  0x89   : > { %857 = vrot.lane.b32.xlu0 %v2785_v30, %s2444_s11 }
  0x8c   : > { %918 = vrot.lane.b32.xlu1 %v577_v22, %s2445_s18 }
  0x8d   : > { %902 = vrot.lane.b32.xlu0 %v481_v24, %s2445_s18 }
  0x8e   : > { %v2804_v50 = vpop.permute.xlu1 %748 }
  0x8f   : > { %v2808_v54 = vpop.permute.xlu0 %732 }
  0x90   : > { %920 = vrot.lane.b32.xlu1 %v589_v52, %s2445_s18 }
  0x91   : > { %904 = vrot.lane.b32.xlu0 %v493_v55, %s2445_s18 }
  0x92   : > { %v2813_v13 = vpop.permute.xlu1 %711 }
  0x93   : > { %v2815_v56 = vpop.permute.xlu0 %695 }
  0x94   : > { %953 = vrot.lane.b32.xlu1 %v685_v44, %s2446_s19 }
  0x95   : > { %937 = vrot.lane.b32.xlu0 %v661_v53, %s2446_s19 }
  0x96   : > { %v2820_v15 = vpop.permute.xlu1 %713 }
  0x97   : > { %v2823_v3 = vpop.permute.xlu0 %697 }
  0x98   : > { %638 = vrot.lane.b32.xlu1 %v577_v22, %s2440_s6 }
  0x99   : > { %622 = vrot.lane.b32.xlu0 %v481_v24, %s2440_s6  ;;  %v2347_v24 = vld [vmem:[%s2531_s30 + $0x50] ss:$0 sps:$4 sm:$0x11]  }
  0x9a   : > { %v2828_v62 = vpop.permute.xlu1 %616  ;;  %v502_v33 = vshll.u32 %v2347_v24, 16  ;;  %v666_v59 = vrot.slane %v2347_v24, 1 }
  0x9b   : > { %v615_v7 = vpop.permute.xlu0 %614 }
  0x9c   : > { %955 = vrot.lane.b32.xlu1 %v688_v61, %s2446_s19  ;;  %v504_v40 = vrot.slane %v502_v33, 1  ;;  %v967_v27 = vsel %vm965_vm4, %v2548_v4, %v615_v7 }
  0x9d   : > { %939 = vrot.lane.b32.xlu0 %v2831_v63, %s2446_s19  ;;  %v1000_v4 = vsel %vm998_vm5, %v967_v27, %v2815_v56  ;;  %v2937_v56 = vld [vmem:[%s2531_s30 + $0x5c] ss:$0 sps:$4 sm:$0x11]  }
  0x9e   : > { %v2836_v16 = vpop.permute.xlu1 %632  ;;  %v2889_v47 = vsel %vm421_vm1, %v500_v38, %v504_v40  ;;  %v1033_v33 = vsel %vm1031_vm7, %v1000_v4, %v2808_v54  ;;  %v514_v27 = vshll.u32 %v2937_v56, 16 }
  0x9f   : > { %v631_v8 = vpop.permute.xlu0 %630  ;;  %v985_v54 = vsel %vm965_vm4, %v2534_v0, %v2836_v16  ;;  %v969_v0 = vsel %vm965_vm4, %v2537_v1, %v2828_v62 }
  0xa0   : > { %640 = vrot.lane.b32.xlu1 %v589_v52, %s2440_s6  ;;  %v983_v60 = vsel %vm965_vm4, %v2544_v2, %v631_v8  ;;  %v1002_v62 = vsel %vm998_vm5, %v969_v0, %v2823_v3 }
  0xa1   : > { %624 = vrot.lane.b32.xlu0 %v493_v55, %s2440_s6  ;;  %v1016_v2 = vsel %vm998_vm5, %v983_v60, %v2813_v13  ;;  %v605_v13 = vshll.u32 %v2908_v25, 16 }
  0xa2   : > { %v2840_v9 = vpop.permute.xlu1 %750  ;;  %v1049_v7 = vsel %vm1031_vm7, %v1016_v2, %v2804_v50 }
  0xa3   : > { %v2842_v18 = vpop.permute.xlu0 %734  ;;  %v607_v40 = vrot.slane %v605_v13, 1 }
  0xa4   : > { %719 = vrot.lane.b32.xlu1 %v685_v44, %s2439_s5  ;;  %v598_v44 = vshll.u32 %v2346_v20, 16  ;;  %v2905_v20 = vsel %vm646_vm0, %v689_v57, %v690_v58 }
  0xa5   : > { %703 = vrot.lane.b32.xlu0 %v661_v53, %s2439_s5 }
  0xa6   : > { %v2849_v14 = vpop.permute.xlu1 %795  ;;  %v600_v36 = vrot.slane %v598_v44, 1 }
  0xa7   : > { %v2854_v19 = vpop.permute.xlu0 %779  ;;  %v1082_v31 = vsel %vm1064_vm6, %v1049_v7, %v2849_v14  ;;  %v516_v7 = vrot.slane %v514_v27, 1 }
  0xa8   : > { %721 = vrot.lane.b32.xlu1 %v688_v61, %s2439_s5  ;;  %v2885_v43 = vsel %vm421_vm1, %v596_v35, %v600_v36  ;;  %v603_v36 = vshrl.u32 %v2908_v25, 16  ;;  %v1066_v14 = vsel %vm1064_vm6, %v1033_v33, %v2854_v19 }
  0xa9   : > { %705 = vrot.lane.b32.xlu0 %v2831_v63, %s2439_s5 }
  0xaa   : > { %v2861_v22 = vpop.permute.xlu1 %797  ;;  %v608_v2 = vor.u32 %v607_v40, %v603_v36 }
  0xab   : > { %v2865_v26 = vpop.permute.xlu0 %781 }
  0xac   : > { %756 = vrot.lane.b32.xlu1 %v2780_v29, %s2438_s4 }
  0xad   : > { %740 = vrot.lane.b32.xlu0 %v2785_v30, %s2438_s4 }
  0xae   : > { %v831_v53 = vpop.permute.xlu1 %830 }
  0xaf   : > { %v2873_v34 = vpop.permute.xlu0 %814  ;;  %v1115_v35 = vsel %vm1097_vm8, %v1082_v31, %v831_v53  ;;  %v1035_v31 = vsel %vm1031_vm7, %v1002_v62, %v2842_v18 }
  0xb0   : > { %758 = vrot.lane.b32.xlu1 %v2846_v11, %s2438_s4  ;;  %v1099_v53 = vsel %vm1097_vm8, %v1066_v14, %v2873_v34  ;;  %v1068_v33 = vsel %vm1064_vm6, %v1035_v31, %v2865_v26 }
  0xb1   : > { %742 = vrot.lane.b32.xlu0 %v2852_v17, %s2438_s4 }
  0xb2   : > { %v2879_v37 = vpop.permute.xlu1 %832 }
  0xb3   : > { %v2881_v41 = vpop.permute.xlu0 %816 }
  0xb4   : > { %803 = vrot.lane.b32.xlu1 %v589_v52, %s2441_s7  ;;  %v1101_v18 = vsel %vm1097_vm8, %v1068_v33, %v2881_v41 }
  0xb5   : > { %787 = vrot.lane.b32.xlu0 %v493_v55, %s2441_s7  ;;  %v665_v55 = vrot.slane %v2852_v17, 1 }
  0xb6   : > { %v868_v45 = vpop.permute.xlu1 %867 }
  0xb7   : > { %v852_v49 = vpop.permute.xlu0 %851  ;;  %v2917_v8 = vsel %vm646_vm0, %v665_v55, %v666_v59  ;;  %v1148_v38 = vsel %vm1130_vm9, %v1115_v35, %v868_v45 }
  0xb8   : > { %805 = vrot.lane.b32.xlu1 %v2885_v43, %s2441_s7  ;;  %v1132_v45 = vsel %vm1130_vm9, %v1099_v53, %v852_v49  ;;  %v1018_v49 = vsel %vm998_vm5, %v985_v54, %v2820_v15  ;;  %v669_v53 = vrot.slane %v2937_v56, 1 }
  0xb9   : > { %789 = vrot.lane.b32.xlu0 %v2889_v47, %s2441_s7  ;;  %v1051_v13 = vsel %vm1031_vm7, %v1018_v49, %v2840_v9 }
  0xba   : > { %v2896_v52 = vpop.permute.xlu1 %869  ;;  %v1084_v15 = vsel %vm1064_vm6, %v1051_v13, %v2861_v22 }
  0xbb   : > { %v2901_v21 = vpop.permute.xlu0 %853  ;;  %v1117_v9 = vsel %vm1097_vm8, %v1084_v15, %v2879_v37 }
  0xbc   : > { %838 = vrot.lane.b32.xlu1 %v688_v61, %s2442_s8  ;;  %v2920_v61 = vld [vmem:[%s2531_s30 + $0x54] sm:$0xff]   ;;  %v1150_v3 = vsel %vm1130_vm9, %v1117_v9, %v2896_v52  ;;  %v1134_v36 = vsel %vm1130_vm9, %v1101_v18, %v2901_v21 }
  0xbd   : > { %822 = vrot.lane.b32.xlu0 %v2831_v63, %s2442_s8  ;;  %v2927_v63 = vld [vmem:[%s2531_s30 + $0xbc] ss:$0 sps:$4 sm:$0x11]   ;;  %v509_v32 = vshll.u32 %v2920_v61, 16  ;;  %v507_v19 = vshrl.u32 %v2920_v61, 16  ;;  %v668_v54 = vrot.slane %v2920_v61, 1 }
  0xbe   : > { %v915_v24 = vpop.permute.xlu1 %914  ;;  %v610_v57 = vshll.u32 %v2927_v63, 16  ;;  %v693_v40 = vrot.slane %v2927_v63, 1 }
  0xbf   : > { %v899_v28 = vpop.permute.xlu0 %898  ;;  %v1181_v58 = vsel %vm1163_vm10, %v1148_v38, %v915_v24  ;;  %v511_v60 = vrot.slane %v509_v32, 1 }
  0xc0   : > { %840 = vrot.lane.b32.xlu1 %v2905_v20, %s2442_s8  ;;  %v1165_v16 = vsel %vm1163_vm10, %v1132_v45, %v899_v28  ;;  %v612_v4 = vrot.slane %v610_v57, 1 }
  0xc1   : > { %824 = vrot.lane.b32.xlu0 %v2917_v8, %s2442_s8  ;;  %v512_v28 = vor.u32 %v511_v60, %v507_v19  ;;  %v670_v19 = vsel %vm646_vm0, %v668_v54, %v669_v53  ;;  %v2352_v60 = vld [vmem:[%s2531_s30 + $0xc0] sm:$0xff]  }
  0xc2   : > { %v917_v44 = vpop.permute.xlu1 %916  ;;  %v2996_v22 = vsel %vm421_vm1, %v608_v2, %v612_v4  ;;  %v811_v18 = vrot.slane %v2352_v60, 1 }
  0xc3   : > { %v901_v50 = vpop.permute.xlu0 %900  ;;  %v1183_v35 = vsel %vm1163_vm10, %v1150_v3, %v917_v44  ;;  %v517_v14 = vsel %vm421_vm1, %v512_v28, %v516_v7  ;;  %v2356_v28 = vld [vmem:[%s2531_s30 + $0x60] sm:$0xff]  }
  0xc4   : > { %875 = vrot.lane.b32.xlu1 %v2846_v11, %s2444_s11  ;;  %v1167_v52 = vsel %vm1163_vm10, %v1134_v36, %v901_v50  ;;  %v692_v50 = vrot.slane %v2908_v25, 1 }
  0xc5   : > { %859 = vrot.lane.b32.xlu0 %v2852_v17, %s2444_s11 }
  0xc6   : > { %v950_v55 = vpop.permute.xlu1 %949 }
  0xc7   : > { %v1214_v59 = vsel %vm1196_vm11, %v1181_v58, %v950_v55  ;;  %v934_v34 = vpop.permute.xlu0 %933  ;;  %v694_v55 = vsel %vm646_vm0, %v692_v50, %v693_v40  ;;  %v3095_v50 = vld [vmem:[%s2531_s30 + $0xd4] ss:$0 sps:$4 sm:$0x11]  }
  0xc8   : > { %877 = vrot.lane.b32.xlu1 %v2908_v25, %s2444_s11  ;;  %2232 = vmatprep.mubr.msk.bf16.mxu1 %vm1486_vm12, %v1214_v59  ;;  %v1198_v24 = vsel %vm1196_vm11, %v1165_v16, %v934_v34  ;;  %v2353_v16 = vld [vmem:[%s2531_s30 + $0xc8] ss:$0 sps:$4 sm:$0x11]   ;;  %v770_v34 = vshll.u32 %v2352_v60, 16 }
  0xc9   : > { %861 = vrot.lane.b32.xlu0 %v2920_v61, %s2444_s11  ;;  %2216 = vmatprep.mubr.msk.bf16.mxu0 %vm1486_vm12, %v1198_v24  ;;  %v775_v4 = vshll.u32 %v2353_v16, 16 }
  0xca   : > { %v2977_v1 = vpop.permute.xlu1 %634  ;;  %v772_v2 = vrot.slane %v770_v34, 1 }
  0xcb   : > { %v2987_v32 = vpop.permute.xlu0 %618  ;;  %v777_v15 = vrot.slane %v775_v4, 1 }
  0xcc   : > { %922 = vrot.lane.b32.xlu1 %v2885_v43, %s2445_s18  ;;  %v971_v54 = vsel %vm965_vm4, %v2588_v46, %v2987_v32 }
  0xcd   : > { %906 = vrot.lane.b32.xlu0 %v2889_v47, %s2445_s18 }
  0xce   : > { %v952_v37 = vpop.permute.xlu1 %951 }
  0xcf   : > { %v1216_v26 = vsel %vm1196_vm11, %v1183_v35, %v952_v37  ;;  %v936_v38 = vpop.permute.xlu0 %935  ;;  %v812_v35 = vrot.slane %v2353_v16, 1 }
  0xd0   : > { %924 = vrot.lane.b32.xlu1 %v2996_v22, %s2445_s18  ;;  %2233 = vmatmul.mubr.msk.bf16.vlgmr.msra.gmra.mrb[0].mxu1 %vm1486_vm12, %v1216_v26  ;;  %v1200_v41 = vsel %vm1196_vm11, %v1167_v52, %v936_v38  ;;  %v3084_v26 = vld [vmem:[%s2531_s30 + $0xcc] sm:$0xff]   ;;  %v987_v52 = vsel %vm965_vm4, %v2581_v39, %v2977_v1 }
  0xd1   : > { %908 = vrot.lane.b32.xlu0 %v517_v14, %s2445_s18  ;;  %2217 = vmatmul.mubr.msk.bf16.vlgmr.msra.gmra.mrb[0].mxu0 %vm1486_vm12, %v1200_v41  ;;  %v889_v40 = vshll.u32 %v3084_v26, 16  ;;  %v887_v46 = vshrl.u32 %v3084_v26, 16 }
  0xd2   : > { %v3014_v44 = vpop.permute.xlu1 %636 }
  0xd3   : > { %v3016_v21 = vpop.permute.xlu0 %620  ;;  %v891_v34 = vrot.slane %v889_v40, 1 }
  0xd4   : > { %957 = vrot.lane.b32.xlu1 %v2905_v20, %s2446_s19 }
  0xd5   : > { %941 = vrot.lane.b32.xlu0 %v2917_v8, %s2446_s19 }
  0xd6   : > { %v3024_v57 = vpop.permute.xlu1 %715 }
  0xd7   : > { %v3028_v58 = vpop.permute.xlu0 %699  ;;  %v1020_v41 = vsel %vm998_vm5, %v987_v52, %v3024_v57 }
  0xd8   : > { %642 = vrot.lane.b32.xlu1 %v2885_v43, %s2440_s6  ;;  %v1004_v1 = vsel %vm998_vm5, %v971_v54, %v3028_v58 }
  0xd9   : > { %626 = vrot.lane.b32.xlu0 %v2889_v47, %s2440_s6 }
  0xda   : > { %v3035_v63 = vpop.permute.xlu1 %717 }
  0xdb   : > { %v3038_v45 = vpop.permute.xlu0 %701 }
  0xdc   : > { %959 = vrot.lane.b32.xlu1 %v694_v55, %s2446_s19 }
  0xdd   : > { %943 = vrot.lane.b32.xlu0 %v670_v19, %s2446_s19 }
  0xde   : > { %v753_v56 = vpop.permute.xlu1 %752 }
  0xdf   : > { %v737_v59 = vpop.permute.xlu0 %736  ;;  %v1053_v53 = vsel %vm1031_vm7, %v1020_v41, %v753_v56  ;;  %v931_v41 = vrot.slane %v3095_v50, 1 }
  0xe0   : > { %644 = vrot.lane.b32.xlu1 %v2996_v22, %s2440_s6  ;;  %v1037_v57 = vsel %vm1031_vm7, %v1004_v1, %v737_v59 }
  0xe1   : > { %628 = vrot.lane.b32.xlu0 %v517_v14, %s2440_s6 }
  0xe2   : > { %v3045_v43 = vpop.permute.xlu1 %754 }
  0xe3   : > { %v3047_v47 = vpop.permute.xlu0 %738 }
  0xe4   : > { %723 = vrot.lane.b32.xlu1 %v2905_v20, %s2439_s5  ;;  %v768_v20 = vshrl.u32 %v2352_v60, 16 }
  0xe5   : > { %707 = vrot.lane.b32.xlu0 %v2917_v8, %s2439_s5 }
  0xe6   : > { %v800_v27 = vpop.permute.xlu1 %799  ;;  %v773_v62 = vor.u32 %v772_v2, %v768_v20  ;;  %v894_v20 = vshll.u32 %v3095_v50, 16 }
  0xe7   : > { %v784_v0 = vpop.permute.xlu0 %783 }
  0xe8   : > { %725 = vrot.lane.b32.xlu1 %v694_v55, %s2439_s5  ;;  %v778_v9 = vsel %vm421_vm1, %v773_v62, %v777_v15  ;;  %v1070_v32 = vsel %vm1064_vm6, %v1037_v57, %v784_v0  ;;  %v989_v0 = vsel %vm965_vm4, %v2624_v6, %v3014_v44  ;;  %v892_v15 = vor.u32 %v891_v34, %v887_v46  ;;  %v2357_v44 = vld [vmem:[%s2531_s30 + $0x6c] sm:$0xff]   ;;  %s218_s30 = sand.u32 1, %s2420_s13  }
  0xe9   : > { %709 = vrot.lane.b32.xlu0 %v670_v19, %s2439_s5  ;;  %s2057_s6 = sshll.u32 %s218_s30, 7  ;;  %s3371_s26 = scalar_lea.sflag [#allocation3], %s218_s30 }
  0xea   : > { %v3057_v49 = vpop.permute.xlu1 %801 }
  0xeb   : > { %v3059_v24 = vpop.permute.xlu0 %785 }
  0xec   : > { %760 = vrot.lane.b32.xlu1 %v2908_v25, %s2438_s4 }
  0xed   : > { %744 = vrot.lane.b32.xlu0 %v2920_v61, %s2438_s4 }
  0xee   : > { %v835_v8 = vpop.permute.xlu1 %834 }
  0xef   : > { %v819_v13 = vpop.permute.xlu0 %818 }
  0xf0   : > { %762 = vrot.lane.b32.xlu1 %v2352_v60, %s2438_s4  ;;  %v1103_v58 = vsel %vm1097_vm8, %v1070_v32, %v819_v13  ;;  %v1022_v13 = vsel %vm998_vm5, %v989_v0, %v3035_v63 }
  0xf1   : > { %746 = vrot.lane.b32.xlu0 %v2356_v28, %s2438_s4  ;;  %v1055_v6 = vsel %vm1031_vm7, %v1022_v13, %v3045_v43 }
  0xf2   : > { %v3068_v7 = vpop.permute.xlu1 %836 }
  0xf3   : > { %v3070_v31 = vpop.permute.xlu0 %820 }
  0xf4   : > { %807 = vrot.lane.b32.xlu1 %v2996_v22, %s2441_s7  ;;  %v3081_v22 = vsel %vm646_vm0, %v811_v18, %v812_v35  ;;  %v1088_v18 = vsel %vm1064_vm6, %v1055_v6, %v3057_v49 }
  0xf5   : > { %791 = vrot.lane.b32.xlu0 %v517_v14, %s2441_s7 }
  0xf6   : > { %v872_v33 = vpop.permute.xlu1 %871 }
  0xf7   : > { %v856_v3 = vpop.permute.xlu0 %855 }
  0xf8   : > { %809 = vrot.lane.b32.xlu1 %v778_v9, %s2441_s7  ;;  %v1136_v2 = vsel %vm1130_vm9, %v1103_v58, %v856_v3 }
  0xf9   : > { %793 = vrot.lane.b32.xlu0 %v2598_v51, %s2441_s7  ;;  %s3270_s7 = scalar_lea.vmem [#allocation2], %s2057_s6 }
  0xfa   : > { %v874_v37 = vpop.permute.xlu1 %873 }
  0xfb   : > { %v858_v36 = vpop.permute.xlu0 %857 }
  0xfc   : > { %842 = vrot.lane.b32.xlu1 %v694_v55, %s2442_s8  ;;  %v1086_v55 = vsel %vm1064_vm6, %v1053_v53, %v800_v27 }
  0xfd   : > { %826 = vrot.lane.b32.xlu0 %v670_v19, %s2442_s8  ;;  %v1119_v19 = vsel %vm1097_vm8, %v1086_v55, %v835_v8 }
  0xfe   : > { %v919_v14 = vpop.permute.xlu1 %918  ;;  %v1152_v56 = vsel %vm1130_vm9, %v1119_v19, %v872_v33  ;;  %v973_v33 = vsel %vm965_vm4, %v2631_v10, %v3016_v21  ;;  %v1121_v10 = vsel %vm1097_vm8, %v1088_v18, %v3068_v7 }
  0xff   : > { %v903_v38 = vpop.permute.xlu0 %902  ;;  %v1185_v27 = vsel %vm1163_vm10, %v1152_v56, %v919_v14  ;;  %v1006_v63 = vsel %vm998_vm5, %v973_v33, %v3038_v45  ;;  %v1154_v14 = vsel %vm1130_vm9, %v1121_v10, %v874_v37 }
 0x100   : > { %844 = vrot.lane.b32.xlu1 %v3081_v22, %s2442_s8  ;;  %v1169_v4 = vsel %vm1163_vm10, %v1136_v2, %v903_v38  ;;  %v1039_v35 = vsel %vm1031_vm7, %v1006_v63, %v3047_v47 }
 0x101   : > { %828 = vrot.lane.b32.xlu0 %v2557_v12, %s2442_s8  ;;  %v1072_v43 = vsel %vm1064_vm6, %v1039_v35, %v3059_v24  ;;  %s2193_s8 = sshll.u32 %s2428_s15, 11 }
 0x102   : > { %v921_v39 = vpop.permute.xlu1 %920  ;;  %v1105_v45 = vsel %vm1097_vm8, %v1072_v43, %v3070_v31  ;;  %v930_v31 = vrot.slane %v3084_v26, 1  ;;  %s3357_s23 = scalar_lea.hbm %s3420_s3, %s2193_s8 }
 0x103   : > { %v905_v16 = vpop.permute.xlu0 %904  ;;  %v1187_v49 = vsel %vm1163_vm10, %v1154_v14, %v921_v39  ;;  %v1138_v7 = vsel %vm1130_vm9, %v1105_v45, %v858_v36 }
 0x104   : > { %879 = vrot.lane.b32.xlu1 %v2352_v60, %s2444_s11  ;;  %v1171_v38 = vsel %vm1163_vm10, %v1138_v7, %v905_v16  ;;  %v932_v40 = vsel %vm646_vm0, %v930_v31, %v931_v41 }
 0x105   : > { %863 = vrot.lane.b32.xlu0 %v2356_v28, %s2444_s11  ;;  %v896_v28 = vrot.slane %v894_v20, 1 }
 0x106   : > { %v954_v59 = vpop.permute.xlu1 %953 }
 0x107   : > { %v1218_v60 = vsel %vm1196_vm11, %v1185_v27, %v954_v59  ;;  %v938_v8 = vpop.permute.xlu0 %937  ;;  %v897_v52 = vsel %vm421_vm1, %v892_v15, %v896_v28 }
 0x108   : > { %881 = vrot.lane.b32.xlu1 %v3084_v26, %s2444_s11  ;;  %2236 = vmatprep.mubr.msk.bf16.mxu1 %vm1486_vm12, %v1218_v60  ;;  %v1202_v62 = vsel %vm1196_vm11, %v1169_v4, %v938_v8 }
 0x109   : > { %865 = vrot.lane.b32.xlu0 %v2357_v44, %s2444_s11  ;;  %2220 = vmatprep.mubr.msk.bf16.mxu0 %vm1486_vm12, %v1202_v62  ;;  %s1937_s11 = sshll.u32 %s3270_s7, 4  ;;  %s3359_s11 = int_to_ptr.vmem [resolvable:$true] %s1937_s11 }
 0x10a   : > { %v639_v3 = vpop.permute.xlu1 %638  ;;  %s2358_s27 = scalar_lea.vmem %s3359_s11, 2048  ;;  %p2365_p1 = scmp.lt.s32.totalorder %s3359_s11, %s2363_s29 }
 0x10b   : > { %v623_v21 = vpop.permute.xlu0 %622  ;;  %p2359_p12 = scmp.ne.s32.totalorder %s3359_s11, %s2358_s27  ;;  %p2366_p2 = scmp.lt.s32.totalorder %s2364_s9, %s2358_s27 }
 0x10c   : > { %926 = vrot.lane.b32.xlu1 %v778_v9, %s2445_s18  ;;  %v975_v0 = vsel %vm965_vm4, %v2749_v42, %v623_v21 }
 0x10d   : > { %910 = vrot.lane.b32.xlu0 %v2598_v51, %s2445_s18  ;;  %p2360_p13 = pnand %p2359_p12, %p2511_p4  ;;  %p2367_p3 = por %p2366_p2, %p2365_p1 }
 0x10e   : > { %v956_v47 = vpop.permute.xlu1 %955 }
 0x10f   : > { %v1220_v9 = vsel %vm1196_vm11, %v1187_v49, %v956_v47  ;;  %v940_v24 = vpop.permute.xlu0 %939  ;;  %p2361_p0 = pneg %p2360_p13 }
 0x110   : > { %928 = vrot.lane.b32.xlu1 %v897_v52, %s2445_s18  ;;  %2237 = vmatmul.mubr.msk.bf16.gmra.mrb[4].mxu1 %vm1486_vm12, %v1220_v9  ;;  %v1204_v37 = vsel %vm1196_vm11, %v1171_v38, %v940_v24 }
 0x111   : > { %912 = vrot.lane.b32.xlu0 %v2593_v48, %s2445_s18  ;;  %2221 = vmatmul.mubr.msk.bf16.gmra.mrb[4].mxu0 %vm1486_vm12, %v1204_v37  ;;  %p2368_p5 = pnand %p2367_p3, %p2361_p0 }
 0x112   : > { %v641_v51 = vpop.permute.xlu1 %640 }
 0x113   : > { %v625_v36 = vpop.permute.xlu0 %624  ;;  %v993_v35 = vsel %vm965_vm4, %v2780_v29, %v641_v51 }
 0x114   : > { %961 = vrot.lane.b32.xlu1 %v3081_v22, %s2446_s19  ;;  %v977_v52 = vsel %vm965_vm4, %v2785_v30, %v625_v36 }
 0x115   : > { %945 = vrot.lane.b32.xlu0 %v2557_v12, %s2446_s19 }
 0x116   : > { %v720_v54 = vpop.permute.xlu1 %719 }
 0x117   : > { %v704_v53 = vpop.permute.xlu0 %703 }
 0x118   : > { %963 = vrot.lane.b32.xlu1 %v932_v40, %s2446_s19  ;;  %v1008_v13 = vsel %vm998_vm5, %v975_v0, %v704_v53 }
 0x119   : > { %947 = vrot.lane.b32.xlu0 %v2569_v23, %s2446_s19  ;;  %v991_v23 = vsel %vm965_vm4, %v2744_v5, %v639_v3 }
 0x11a   : > { %v722_v48 = vpop.permute.xlu1 %721  ;;  %v1024_v60 = vsel %vm998_vm5, %v991_v23, %v720_v54 }
 0x11b   : > { %v706_v26 = vpop.permute.xlu0 %705  ;;  %v1026_v43 = vsel %vm998_vm5, %v993_v35, %v722_v48 }
 0x11c   : > { %v1010_v47 = vsel %vm998_vm5, %v977_v52, %v706_v26 }
 0x11e   : > { %v757_v50 = vpop.permute.xlu1 %756 }
 0x11f   : > { %v741_v39 = vpop.permute.xlu0 %740  ;;  %v1057_v4 = vsel %vm1031_vm7, %v1024_v60, %v757_v50 }
 0x120   : > { %v1041_v15 = vsel %vm1031_vm7, %v1008_v13, %v741_v39 }
 0x122   : > { %v759_v1 = vpop.permute.xlu1 %758 }
 0x123   : > { %v743_v55 = vpop.permute.xlu0 %742  ;;  %v1059_v45 = vsel %vm1031_vm7, %v1026_v43, %v759_v1 }
 0x124   : > { %v1043_v7 = vsel %vm1031_vm7, %v1010_v47, %v743_v55 }
 0x126   : > { %v804_v57 = vpop.permute.xlu1 %803 }
 0x127   : > { %v788_v22 = vpop.permute.xlu0 %787  ;;  %v1090_v62 = vsel %vm1064_vm6, %v1057_v4, %v804_v57 }
 0x128   : > { %v1074_v5 = vsel %vm1064_vm6, %v1041_v15, %v788_v22 }
 0x12a   : > { %v806_v19 = vpop.permute.xlu1 %805 }
 0x12b   : > { %v790_v16 = vpop.permute.xlu0 %789  ;;  %v1092_v29 = vsel %vm1064_vm6, %v1059_v45, %v806_v19 }
 0x12c   : > { %v1076_v24 = vsel %vm1064_vm6, %v1043_v7, %v790_v16 }
 0x12e   : > { %v839_v46 = vpop.permute.xlu1 %838 }
 0x12f   : > { %v823_v32 = vpop.permute.xlu0 %822  ;;  %v1123_v28 = vsel %vm1097_vm8, %v1090_v62, %v839_v46 }
 0x130   : > { %v1107_v44 = vsel %vm1097_vm8, %v1074_v5, %v823_v32 }
 0x132   : > { %v841_v12 = vpop.permute.xlu1 %840 }
 0x133   : > { %v825_v56 = vpop.permute.xlu0 %824  ;;  %v1125_v9 = vsel %vm1097_vm8, %v1092_v29, %v841_v12 }
 0x134   : > { %v1109_v30 = vsel %vm1097_vm8, %v1076_v24, %v825_v56 }
 0x136   : > { %v876_v34 = vpop.permute.xlu1 %875 }
 0x137   : > { %v860_v20 = vpop.permute.xlu0 %859  ;;  %v1156_v6 = vsel %vm1130_vm9, %v1123_v28, %v876_v34 }
 0x138   : > { %v1140_v63 = vsel %vm1130_vm9, %v1107_v44, %v860_v20 }
 0x13a   : > { %v878_v58 = vpop.permute.xlu1 %877 }
 0x13b   : > { %v862_v27 = vpop.permute.xlu0 %861  ;;  %v1158_v37 = vsel %vm1130_vm9, %v1125_v9, %v878_v58 }
 0x13c   : > { %v1142_v51 = vsel %vm1130_vm9, %v1109_v30, %v862_v27 }
 0x13e   : > { %v923_v59 = vpop.permute.xlu1 %922 }
 0x13f   : > { %v907_v2 = vpop.permute.xlu0 %906  ;;  %v1189_v42 = vsel %vm1163_vm10, %v1156_v6, %v923_v59 }
 0x140   : > { %v1173_v10 = vsel %vm1163_vm10, %v1140_v63, %v907_v2 }
 0x142   : > { %v925_v8 = vpop.permute.xlu1 %924 }
 0x143   : > { %v909_v33 = vpop.permute.xlu0 %908  ;;  %v1191_v31 = vsel %vm1163_vm10, %v1158_v37, %v925_v8 }
 0x144   : > { %v1175_v40 = vsel %vm1163_vm10, %v1142_v51, %v909_v33 }
 0x146   : > { %v958_v3 = vpop.permute.xlu1 %957 }
 0x147   : > { %v1222_v18 = vsel %vm1196_vm11, %v1189_v42, %v958_v3  ;;  %v942_v21 = vpop.permute.xlu0 %941 }
 0x148   : > { %2240 = vmatprep.mubr.msk.bf16.mxu1 %vm1486_vm12, %v1222_v18  ;;  %v1206_v14 = vsel %vm1196_vm11, %v1173_v10, %v942_v21 }
 0x149   : > { %2224 = vmatprep.mubr.msk.bf16.mxu0 %vm1486_vm12, %v1206_v14 }
 0x14a   : > { %v643_v49 = vpop.permute.xlu1 %642 }
 0x14b   : > { %v627_v38 = vpop.permute.xlu0 %626  ;;  %v995_v4 = vsel %vm965_vm4, %v2846_v11, %v643_v49 }
 0x14c   : > { %v979_v62 = vsel %vm965_vm4, %v2852_v17, %v627_v38 }
 0x14e   : > { %v960_v41 = vpop.permute.xlu1 %959 }
 0x14f   : > { %v1224_v36 = vsel %vm1196_vm11, %v1191_v31, %v960_v41  ;;  %v944_v54 = vpop.permute.xlu0 %943 }
 0x150   : > { %2241 = vmatmul.mubr.msk.bf16.gmra.mrb[8].mxu1 %vm1486_vm12, %v1224_v36  ;;  %v1208_v53 = vsel %vm1196_vm11, %v1175_v40, %v944_v54  ;;  %v3258_v54 = vld [vmem:[%s3419_s2] ss:$0 sm:$0xff] }
 0x151   : > { %2225 = vmatmul.mubr.msk.bf16.gmra.mrb[8].mxu0 %vm1486_vm12, %v1208_v53 }
 0x152   : > { %v645_v48 = vpop.permute.xlu1 %644 }
 0x153   : > { %v629_v26 = vpop.permute.xlu0 %628  ;;  %v997_v6 = vsel %vm965_vm4, %v2908_v25, %v645_v48 }
 0x154   : > { %v981_v18 = vsel %vm965_vm4, %v2920_v61, %v629_v26 }
 0x156   : > { %v724_v50 = vpop.permute.xlu1 %723 }
 0x157   : > { %v708_v39 = vpop.permute.xlu0 %707  ;;  %v1028_v13 = vsel %vm998_vm5, %v995_v4, %v724_v50 }
 0x158   : > { %v1012_v33 = vsel %vm998_vm5, %v979_v62, %v708_v39 }
 0x15a   : > { %v726_v1 = vpop.permute.xlu1 %725 }
 0x15b   : > { %v710_v55 = vpop.permute.xlu0 %709  ;;  %v1030_v3 = vsel %vm998_vm5, %v997_v6, %v726_v1 }
 0x15c   : > { %v1014_v43 = vsel %vm998_vm5, %v981_v18, %v710_v55 }
 0x15e   : > { %v761_v57 = vpop.permute.xlu1 %760 }
 0x15f   : > { %v745_v22 = vpop.permute.xlu0 %744  ;;  %v1061_v15 = vsel %vm1031_vm7, %v1028_v13, %v761_v57 }
 0x160   : > { %v1045_v44 = vsel %vm1031_vm7, %v1012_v33, %v745_v22 }
 0x162   : > { %v763_v19 = vpop.permute.xlu1 %762 }
 0x163   : > { %v747_v16 = vpop.permute.xlu0 %746  ;;  %v1063_v35 = vsel %vm1031_vm7, %v1030_v3, %v763_v19 }
 0x164   : > { %v1047_v49 = vsel %vm1031_vm7, %v1014_v43, %v747_v16 }
 0x166   : > { %v808_v46 = vpop.permute.xlu1 %807 }
 0x167   : > { %v792_v32 = vpop.permute.xlu0 %791  ;;  %v1094_v5 = vsel %vm1064_vm6, %v1061_v15, %v808_v46 }
 0x168   : > { %v1078_v63 = vsel %vm1064_vm6, %v1045_v44, %v792_v32 }
 0x16a   : > { %v810_v12 = vpop.permute.xlu1 %809 }
 0x16b   : > { %v794_v56 = vpop.permute.xlu0 %793  ;;  %v1096_v14 = vsel %vm1064_vm6, %v1063_v35, %v810_v12 }
 0x16c   : > { %v1080_v7 = vsel %vm1064_vm6, %v1047_v49, %v794_v56 }
 0x16e   : > { %v843_v34 = vpop.permute.xlu1 %842 }
 0x16f   : > { %v827_v20 = vpop.permute.xlu0 %826  ;;  %v1127_v11 = vsel %vm1097_vm8, %v1094_v5, %v843_v34 }
 0x170   : > { %v1111_v10 = vsel %vm1097_vm8, %v1078_v63, %v827_v20 }
 0x172   : > { %v845_v58 = vpop.permute.xlu1 %844 }
 0x173   : > { %v829_v27 = vpop.permute.xlu0 %828  ;;  %v1129_v47 = vsel %vm1097_vm8, %v1096_v14, %v845_v58 }
 0x174   : > { %v1113_v24 = vsel %vm1097_vm8, %v1080_v7, %v829_v27 }
 0x176   : > { %v880_v59 = vpop.permute.xlu1 %879 }
 0x177   : > { %v864_v23 = vpop.permute.xlu0 %863  ;;  %v1160_v17 = vsel %vm1130_vm9, %v1127_v11, %v880_v59 }
 0x178   : > { %v1144_v52 = vsel %vm1130_vm9, %v1111_v10, %v864_v23 }
 0x17a   : > { %v882_v2 = vpop.permute.xlu1 %881 }
 0x17b   : > { %v866_v60 = vpop.permute.xlu0 %865  ;;  %v1162_v9 = vsel %vm1130_vm9, %v1129_v47, %v882_v2 }
 0x17c   : > { %v1146_v31 = vsel %vm1130_vm9, %v1113_v24, %v866_v60 }
 0x17e   : > { %v927_v0 = vpop.permute.xlu1 %926 }
 0x17f   : > { %v911_v8 = vpop.permute.xlu0 %910  ;;  %v1193_v25 = vsel %vm1163_vm10, %v1160_v17, %v927_v0 }
 0x180   : > { %v1177_v61 = vsel %vm1163_vm10, %v1144_v52, %v911_v8 }
 0x182   : > { %v929_v28 = vpop.permute.xlu1 %928 }
 0x183   : > { %v913_v42 = vpop.permute.xlu0 %912  ;;  %v1195_v37 = vsel %vm1163_vm10, %v1162_v9, %v929_v28 }
 0x184   : > { %v1179_v51 = vsel %vm1163_vm10, %v1146_v31, %v913_v42 }
 0x186   : > { %v962_v21 = vpop.permute.xlu1 %961 }
 0x187   : > { %v1226_v45 = vsel %vm1196_vm11, %v1193_v25, %v962_v21  ;;  %v946_v29 = vpop.permute.xlu0 %945 }
 0x188   : > { %2244 = vmatprep.mubr.msk.bf16.mxu1 %vm1486_vm12, %v1226_v45  ;;  %v1210_v38 = vsel %vm1196_vm11, %v1177_v61, %v946_v29 }
 0x189   : > { %2228 = vmatprep.mubr.msk.bf16.mxu0 %vm1486_vm12, %v1210_v38 }
 0x18a   : > { %v964_v30 = vpop.permute.xlu1 %963 }
 0x18b   : > { %v1228_v41 = vsel %vm1196_vm11, %v1195_v37, %v964_v30  ;;  %v948_v36 = vpop.permute.xlu0 %947 }
 0x18c   : > { %2245 = vmatmul.mubr.msk.bf16.gmra.mrb[12].mxu1 %vm1486_vm12, %v1228_v41  ;;  %v1212_v40 = vsel %vm1196_vm11, %v1179_v51, %v948_v36 }
 0x18d   : > { %2229 = vmatmul.mubr.msk.bf16.gmra.mrb[12].mxu0 %vm1486_vm12, %v1212_v40 }
 0x1a3   : > { %v2234_v53 = vpop.f32.mrb[0].mxu1 }
 0x1a4   : > { %v1712_v48 = vadd.f32 %v2234_v53, %v3258_v54  ;;  %v1624_v26 = vpop.f32.mrb[1].mxu1  ;;  %v2218_v50 = vpop.f32.mrb[0].mxu0 }
 0x1a5   : > { %v1710_v39 = vadd.f32 %v3258_v54, %v1624_v26  ;;  %v2235_v1 = vpop.f32.mrb[2].mxu1  ;;  %v1696_v55 = vadd.f32 %v2218_v50, %v3258_v54  ;;  %v1560_v22 = vpop.f32.mrb[1].mxu0 }
 0x1a6   : > { %v1744_v57 = vmax.f32 %v1712_v48, 0.0  ;;  %v1713_v19 = vadd.f32 %v2235_v1, %v3258_v54  ;;  %v1627_v16 = vpop.f32.mrb[3].mxu1  ;;  %v1694_v46 = vadd.f32 %v3258_v54, %v1560_v22  ;;  %v2219_v12 = vpop.f32.mrb[2].mxu0 }
 0x1a7   : > { %v1742_v32 = vmax.f32 %v1710_v39, 0.0  ;;  %v1711_v56 = vadd.f32 %v3258_v54, %v1627_v16  ;;  %v1728_v34 = vmax.f32 %v1696_v55, 0.0  ;;  %v1697_v58 = vadd.f32 %v2219_v12, %v3258_v54  ;;  %v1563_v59 = vpop.f32.mrb[3].mxu0 }
 0x1a8   : > { %v2179_v20 = vpack.c.bf16 %v1744_v57, %v1744_v57  ;;  %v1745_v27 = vmax.f32 %v1713_v19, 0.0  ;;  %v1726_v23 = vmax.f32 %v1694_v46, 0.0  ;;  %v1695_v60 = vadd.f32 %v3258_v54, %v1563_v59 }
 0x1a9   : > { %v2177_v2 = vpack.c.bf16 %v1742_v32, %v1742_v32  ;;  %v1743_v0 = vmax.f32 %v1711_v56, 0.0  ;;  %v2163_v4 = vpack.c.bf16 %v1728_v34, %v1728_v34  ;;  %v1729_v8 = vmax.f32 %v1697_v58, 0.0 }
 0x1aa   : > { %1905 = vst.msk [vmem:[%s3270_s7 + $0x48] sm:$0xf] %vm1886_vm13, %v2179_v20  ;;  %v2180_v13 = vpack.c.bf16 %v1745_v27, %v1745_v27  ;;  %v2161_v62 = vpack.c.bf16 %v1726_v23, %v1726_v23  ;;  %v1727_v15 = vmax.f32 %v1695_v60, 0.0 }
 0x1ab   : > { %1903 = vst.msk [vmem:[%s3270_s7 + $0x40] sm:$0xf] %vm1886_vm13, %v2177_v2  ;;  %v2178_v28 = vpack.c.bf16 %v1743_v0, %v1743_v0  ;;  %1889 = vst.msk [vmem:[%s3270_s7 + $0x8] sm:$0xf] %vm1886_vm13, %v2163_v4  ;;  %v2164_v33 = vpack.c.bf16 %v1729_v8, %v1729_v8 }
 0x1ac   : > { %1906 = vst.msk [vmem:[%s3270_s7 + $0x4c] sm:$0xf] %vm1886_vm13, %v2180_v13  ;;  %1887 = vst.msk [vmem:[%s3270_s7] sm:$0xf] %vm1886_vm13, %v2161_v62  ;;  %v2162_v5 = vpack.c.bf16 %v1727_v15, %v1727_v15 }
 0x1ad   : > { %1904 = vst.msk [vmem:[%s3270_s7 + $0x44] sm:$0xf] %vm1886_vm13, %v2178_v28  ;;  %1890 = vst.msk [vmem:[%s3270_s7 + $0xc] sm:$0xf] %vm1886_vm13, %v2164_v33 }
 0x1ae   : > { %1888 = vst.msk [vmem:[%s3270_s7 + $0x4] sm:$0xf] %vm1886_vm13, %v2162_v5 }
 0x1e3   : > { %v2238_v6 = vpop.f32.mrb[4].mxu1 }
 0x1e4   : > { %v1716_v44 = vadd.f32 %v2238_v6, %v3258_v54  ;;  %v1640_v11 = vpop.f32.mrb[5].mxu1  ;;  %v2222_v42 = vpop.f32.mrb[4].mxu0 }
 0x1e5   : > { %v1714_v3 = vadd.f32 %v3258_v54, %v1640_v11  ;;  %v2239_v63 = vpop.f32.mrb[6].mxu1  ;;  %v1700_v17 = vadd.f32 %v2222_v42, %v3258_v54  ;;  %v1576_v35 = vpop.f32.mrb[5].mxu0 }
 0x1e6   : > { %v1748_v18 = vmax.f32 %v1716_v44, 0.0  ;;  %v1717_v10 = vadd.f32 %v2239_v63, %v3258_v54  ;;  %v1643_v25 = vpop.f32.mrb[7].mxu1  ;;  %v1698_v21 = vadd.f32 %v3258_v54, %v1576_v35  ;;  %v2223_v14 = vpop.f32.mrb[6].mxu0 }
 0x1e7   : > { %v1746_v43 = vmax.f32 %v1714_v3, 0.0  ;;  %v1715_v52 = vadd.f32 %v3258_v54, %v1643_v25  ;;  %v1732_v45 = vmax.f32 %v1700_v17, 0.0  ;;  %v1701_v47 = vadd.f32 %v2223_v14, %v3258_v54  ;;  %v1579_v29 = vpop.f32.mrb[7].mxu0 }
 0x1e8   : > { %v2183_v49 = vpack.c.bf16 %v1748_v18, %v1748_v18  ;;  %v1749_v61 = vmax.f32 %v1717_v10, 0.0  ;;  %v1730_v7 = vmax.f32 %v1698_v21, 0.0  ;;  %v1699_v38 = vadd.f32 %v3258_v54, %v1579_v29 }
 0x1e9   : > { %v2181_v9 = vpack.c.bf16 %v1746_v43, %v1746_v43  ;;  %v1747_v24 = vmax.f32 %v1715_v52, 0.0  ;;  %v2167_v37 = vpack.c.bf16 %v1732_v45, %v1732_v45  ;;  %v1733_v30 = vmax.f32 %v1701_v47, 0.0 }
 0x1ea   : > { %1909 = vst.msk [vmem:[%s3270_s7 + $0x58] sm:$0xf] %vm1886_vm13, %v2183_v49  ;;  %v2184_v31 = vpack.c.bf16 %v1749_v61, %v1749_v61  ;;  %v2165_v41 = vpack.c.bf16 %v1730_v7, %v1730_v7  ;;  %v1731_v51 = vmax.f32 %v1699_v38, 0.0 }
 0x1eb   : > { %1907 = vst.msk [vmem:[%s3270_s7 + $0x50] sm:$0xf] %vm1886_vm13, %v2181_v9  ;;  %v2182_v36 = vpack.c.bf16 %v1747_v24, %v1747_v24  ;;  %1893 = vst.msk [vmem:[%s3270_s7 + $0x18] sm:$0xf] %vm1886_vm13, %v2167_v37  ;;  %v2168_v40 = vpack.c.bf16 %v1733_v30, %v1733_v30 }
 0x1ec   : > { %1910 = vst.msk [vmem:[%s3270_s7 + $0x5c] sm:$0xf] %vm1886_vm13, %v2184_v31  ;;  %1891 = vst.msk [vmem:[%s3270_s7 + $0x10] sm:$0xf] %vm1886_vm13, %v2165_v41  ;;  %v2166_v53 = vpack.c.bf16 %v1731_v51, %v1731_v51 }
 0x1ed   : > { %1908 = vst.msk [vmem:[%s3270_s7 + $0x54] sm:$0xf] %vm1886_vm13, %v2182_v36  ;;  %1894 = vst.msk [vmem:[%s3270_s7 + $0x1c] sm:$0xf] %vm1886_vm13, %v2168_v40 }
 0x1ee   : > { %1892 = vst.msk [vmem:[%s3270_s7 + $0x14] sm:$0xf] %vm1886_vm13, %v2166_v53 }
 0x223   : > { %v2242_v48 = vpop.f32.mrb[8].mxu1 }
 0x224   : > { %v1720_v26 = vadd.f32 %v2242_v48, %v3258_v54  ;;  %v1656_v50 = vpop.f32.mrb[9].mxu1  ;;  %v2226_v39 = vpop.f32.mrb[8].mxu0 }
 0x225   : > { %v1718_v1 = vadd.f32 %v3258_v54, %v1656_v50  ;;  %v2243_v55 = vpop.f32.mrb[10].mxu1  ;;  %v1704_v57 = vadd.f32 %v2226_v39, %v3258_v54  ;;  %v1592_v19 = vpop.f32.mrb[9].mxu0 }
 0x226   : > { %v1752_v22 = vmax.f32 %v1720_v26, 0.0  ;;  %v1721_v16 = vadd.f32 %v2243_v55, %v3258_v54  ;;  %v1659_v46 = vpop.f32.mrb[11].mxu1  ;;  %v1702_v32 = vadd.f32 %v3258_v54, %v1592_v19  ;;  %v2227_v56 = vpop.f32.mrb[10].mxu0 }
 0x227   : > { %v1750_v12 = vmax.f32 %v1718_v1, 0.0  ;;  %v1719_v34 = vadd.f32 %v3258_v54, %v1659_v46  ;;  %v1736_v20 = vmax.f32 %v1704_v57, 0.0  ;;  %v1705_v27 = vadd.f32 %v2227_v56, %v3258_v54  ;;  %v1595_v23 = vpop.f32.mrb[11].mxu0 }
 0x228   : > { %v2187_v58 = vpack.c.bf16 %v1752_v22, %v1752_v22  ;;  %v1753_v59 = vmax.f32 %v1721_v16, 0.0  ;;  %v1734_v2 = vmax.f32 %v1702_v32, 0.0  ;;  %v1703_v0 = vadd.f32 %v3258_v54, %v1595_v23 }
 0x229   : > { %v2185_v60 = vpack.c.bf16 %v1750_v12, %v1750_v12  ;;  %v1751_v4 = vmax.f32 %v1719_v34, 0.0  ;;  %v2171_v8 = vpack.c.bf16 %v1736_v20, %v1736_v20  ;;  %v1737_v13 = vmax.f32 %v1705_v27, 0.0 }
 0x22a   : > { %1913 = vst.msk [vmem:[%s3270_s7 + $0x68] sm:$0xf] %vm1886_vm13, %v2187_v58  ;;  %v2188_v62 = vpack.c.bf16 %v1753_v59, %v1753_v59  ;;  %v2169_v15 = vpack.c.bf16 %v1734_v2, %v1734_v2  ;;  %v1735_v28 = vmax.f32 %v1703_v0, 0.0 }
 0x22b   : > { %1911 = vst.msk [vmem:[%s3270_s7 + $0x60] sm:$0xf] %vm1886_vm13, %v2185_v60  ;;  %v2186_v33 = vpack.c.bf16 %v1751_v4, %v1751_v4  ;;  %1897 = vst.msk [vmem:[%s3270_s7 + $0x28] sm:$0xf] %vm1886_vm13, %v2171_v8  ;;  %v2172_v5 = vpack.c.bf16 %v1737_v13, %v1737_v13 }
 0x22c   : > { %1914 = vst.msk [vmem:[%s3270_s7 + $0x6c] sm:$0xf] %vm1886_vm13, %v2188_v62  ;;  %1895 = vst.msk [vmem:[%s3270_s7 + $0x20] sm:$0xf] %vm1886_vm13, %v2169_v15  ;;  %v2170_v6 = vpack.c.bf16 %v1735_v28, %v1735_v28 }
 0x22d   : > { %1912 = vst.msk [vmem:[%s3270_s7 + $0x64] sm:$0xf] %vm1886_vm13, %v2186_v33  ;;  %1898 = vst.msk [vmem:[%s3270_s7 + $0x2c] sm:$0xf] %vm1886_vm13, %v2172_v5 }
 0x22e   : > { %1896 = vst.msk [vmem:[%s3270_s7 + $0x24] sm:$0xf] %vm1886_vm13, %v2170_v6 }
 0x25f   : > { %v2246_v44 = vpop.f32.mrb[12].mxu1 }
 0x260   : > { %v1724_v11 = vadd.f32 %v2246_v44, %v3258_v54  ;;  %v1672_v42 = vpop.f32.mrb[13].mxu1  ;;  %v2230_v3 = vpop.f32.mrb[12].mxu0 }
 0x261   : > { %v1722_v63 = vadd.f32 %v3258_v54, %v1672_v42  ;;  %v2247_v17 = vpop.f32.mrb[14].mxu1  ;;  %v1708_v18 = vadd.f32 %v2230_v3, %v3258_v54  ;;  %v1608_v10 = vpop.f32.mrb[13].mxu0 }
 0x262   : > { %v1756_v35 = vmax.f32 %v1724_v11, 0.0  ;;  %v1725_v25 = vadd.f32 %v2247_v17, %v3258_v54  ;;  %v1675_v21 = vpop.f32.mrb[15].mxu1  ;;  %v1706_v43 = vadd.f32 %v3258_v54, %v1608_v10  ;;  %v2231_v52 = vpop.f32.mrb[14].mxu0 }
 0x263   : > { %v1754_v14 = vmax.f32 %v1722_v63, 0.0  ;;  %v1723_v45 = vadd.f32 %v3258_v54, %v1675_v21  ;;  %v1740_v49 = vmax.f32 %v1708_v18, 0.0  ;;  %v1709_v61 = vadd.f32 %v2231_v52, %v3258_v54  ;;  %v1611_v7 = vpop.f32.mrb[15].mxu0 }
 0x264   : > { %v2191_v47 = vpack.c.bf16 %v1756_v35, %v1756_v35  ;;  %v1757_v29 = vmax.f32 %v1725_v25, 0.0  ;;  %v1738_v9 = vmax.f32 %v1706_v43, 0.0  ;;  %v1707_v24 = vadd.f32 %v3258_v54, %v1611_v7 }
 0x265   : > { %v2189_v38 = vpack.c.bf16 %v1754_v14, %v1754_v14  ;;  %v1755_v37 = vmax.f32 %v1723_v45, 0.0  ;;  %v2175_v30 = vpack.c.bf16 %v1740_v49, %v1740_v49  ;;  %v1741_v31 = vmax.f32 %v1709_v61, 0.0 }
 0x266   : > { %1917 = vst.msk [vmem:[%s3270_s7 + $0x78] sm:$0xf] %vm1886_vm13, %v2191_v47  ;;  %v2192_v41 = vpack.c.bf16 %v1757_v29, %v1757_v29  ;;  %v2173_v51 = vpack.c.bf16 %v1738_v9, %v1738_v9  ;;  %v1739_v36 = vmax.f32 %v1707_v24, 0.0 }
 0x267   : > { %1915 = vst.msk [vmem:[%s3270_s7 + $0x70] sm:$0xf] %vm1886_vm13, %v2189_v38  ;;  %v2190_v40 = vpack.c.bf16 %v1755_v37, %v1755_v37  ;;  %1901 = vst.msk [vmem:[%s3270_s7 + $0x38] sm:$0xf] %vm1886_vm13, %v2175_v30  ;;  %v2176_v54 = vpack.c.bf16 %v1741_v31, %v1741_v31 }
 0x268   : > { %1918 = vst.msk [vmem:[%s3270_s7 + $0x7c] sm:$0xf] %vm1886_vm13, %v2192_v41  ;;  %1899 = vst.msk [vmem:[%s3270_s7 + $0x30] sm:$0xf] %vm1886_vm13, %v2173_v51  ;;  %v2174_v53 = vpack.c.bf16 %v1739_v36, %v1739_v36 }
 0x269   : > { %1916 = vst.msk [vmem:[%s3270_s7 + $0x74] sm:$0xf] %vm1886_vm13, %v2190_v40  ;;  %1902 = vst.msk [vmem:[%s3270_s7 + $0x3c] sm:$0xf] %vm1886_vm13, %v2176_v54 }
 0x26a   : > { %1900 = vst.msk [vmem:[%s3270_s7 + $0x34] sm:$0xf] %vm1886_vm13, %v2174_v53 }
 0x26b   : > { %2371 = shalt.err (!%p2368_p5)
}
 0x26c   : > { %s2372_s10 = scalar_lea.hbm %s3357_s23, 2048  ;;  %s2376_s30 = scalar_lea.hbm %s3420_s3, 4096 }
 0x26d   : > { %p2373_p6 = scmp.ne.s32.totalorder %s3357_s23, %s2372_s10  ;;  %p2377_p10 = scmp.lt.u32.totalorder %s3357_s23, %s3420_s3 }
 0x26e   : > { %p2378_p11 = scmp.lt.u32.totalorder %s2376_s30, %s2372_s10  ;;  %p2380_p13 = scmp.lt.u32.totalorder %s2372_s10, %s3357_s23 }
 0x26f   : > { %p2374_p7 = pnand %p2373_p6, %p2511_p4 }
 0x270   : > { %p2379_p12 = por %p2378_p11, %p2377_p10 }
 0x271   : > { %p2375_p9 = pneg %p2374_p7 }
 0x272   : > { %p2381_p0 = por %p2380_p13, %p2379_p12 }
 0x274   : > { %p2382_p1 = pnand %p2381_p0, %p2375_p9 }
 0x276   : > { %2385 = shalt.err (!%p2382_p1)
}
 0x277   : > { %s2449_s6 = smov 64   ;;  %s2450_s7 = smov 4  }
 0x278   : > { %2253 = dma.vmem_to_hbm [thread:$0]  (%p2511_p4), %s3359_s11, 2048, %s3357_s23, %s3371_s26, %s2449_s6, %s2449_s6, %s2450_s7  }
 0x279 PF: > { %p2259_p2 = scmp.ge.s32.totalorder %s2436_s17, 2  ;;  %s1952_s8 = sand.u32 1, %s2416_s12  }
 0x27a   : > { %s1953_s15 = scalar_lea.sflag [#allocation3], %s1952_s8 }
 0x27b   : > { %p2256_p3 = pnand %p2259_p2, %p2518_p8 }
 0x27d   : > { %2411 = dma.done.wait (!%p2256_p3), %s1953_s15, 2048  }
 0x27e   : > { %2413 = vsyncadd (!%p2256_p3), %s1953_s15, 4294965248  ;;  %s16_s17 = sadd.s32 1, %s2436_s17   ;;  %s3423_s12 = smov %s2420_s13 }
 0x27f   : > { %p13_p5 = scmp.ge.s32.totalorder %s16_s17, 4   ;;  %s3424_s13 = smov %s2424_s14 }
 0x280   : > { %s3425_s14 = smov %s2524_s25  ;;  %s3426_s15 = smov %s2432_s16 }
 0x281   : > { %s3427_s16 = smov %s3429_s20  ;;  %15 = sbr.rel (!%p13_p5) target bundleno = 4 (0x4), region = 73 }
 0x288   :  { %1958 = vsyncpa [#allocation3], 1 }
 0x289   :  { %1960 = vsyncpa [#allocation3 + $0x1], 1 }

</bundles_post_ra>
